<compile_context>
chip_gen: v6e
topology: v6e:2x2x1
jax: 0.10.0
libtpu: 0.0.40
codegen_flags: <defaults>
</compile_context>

<pallas_src>
import jax
import jax.numpy as jnp
from jax import lax
from jax.experimental import pallas as pl
from jax.experimental.pallas import tpu as pltpu

NODE_FEATURES = 39
EDGE_FEATURES = 10

_SMEM = pl.BlockSpec(memory_space=pltpu.MemorySpace.SMEM)
_VMEM = pl.BlockSpec(memory_space=pltpu.MemorySpace.VMEM)


# ----------------------------------------------------------------------------
# Fused GraphLayer kernel:
#   gather -> edge Linear+PReLU -> scatter-add -> node Linear+PReLU
# ----------------------------------------------------------------------------
def _graph_layer_kernel(send_ref, recv_ref,            # SMEM int32 (E,)
                        node_ref, edge_ref,            # VMEM (N,Fn) f32, (E,Fe) f32
                        we_n_ref, we_e_ref, ae_ref,    # edge model (bf16 W, f32 alpha)
                        wn_u_ref, wn_n_ref, an_ref,    # node model (bf16 W, f32 alpha)
                        node_out_ref, edge_out_ref,    # outputs (N,H) f32, (E,H) f32
                        sender_buf, node_acc):         # VMEM scratch
    n_edges = edge_ref.shape[0]

    # 1) Gather sender rows: sender_buf[e, :] = node[senders[e], :]
    #    (index-driven, O(E*Fn); indices read from SMEM, dynamic row slices in VMEM)
    def gather_body(e, carry):
        s = send_ref[e]
        sender_buf[pl.ds(e, 1), :] = node_ref[pl.ds(s, 1), :]
        return carry
    lax.fori_loop(0, n_edges, gather_body, 0)

    # 2) Edge model: PReLU([sender | edge] @ We)   -- concat eliminated by weight split.
    #    bf16 MXU operands, f32 accumulation / epilogue.
    y = jnp.dot(sender_buf[...].astype(jnp.bfloat16), we_n_ref[...],
                preferred_element_type=jnp.float32)
    y = y + jnp.dot(edge_ref[...].astype(jnp.bfloat16), we_e_ref[...],
                    preferred_element_type=jnp.float32)
    edge_out_ref[...] = jnp.where(y > 0, y, ae_ref[...] * y)
    # TODO(synk): Dropout2d(p=0.1) on updated edges -- identity in eval mode.

    # 3) Scatter-add (index_add_): node_acc[receivers[e], :] += updated_edge[e, :]
    node_acc[...] = jnp.zeros_like(node_acc)

    def scatter_body(e, carry):
        r = recv_ref[e]
        node_acc[pl.ds(r, 1), :] = (node_acc[pl.ds(r, 1), :]
                                    + edge_out_ref[pl.ds(e, 1), :])
        return carry
    lax.fori_loop(0, n_edges, scatter_body, 0)

    # 4) Node model: PReLU([node_update | node] @ Wn)
    z = jnp.dot(node_acc[...].astype(jnp.bfloat16), wn_u_ref[...],
                preferred_element_type=jnp.float32)
    z = z + jnp.dot(node_ref[...].astype(jnp.bfloat16), wn_n_ref[...],
                    preferred_element_type=jnp.float32)
    node_out_ref[...] = jnp.where(z > 0, z, an_ref[...] * z)


def graph_layer_forward(lp, node_feats, edge_feats, senders, receivers):
    N, Fn = node_feats.shape
    E, Fe = edge_feats.shape
    H = lp["edge_a"].shape[-1]

    # Split weights so the concat never materializes (concat order: [sender, edge] and
    # [update, node], matching torch.cat in the reference module).
    we_n = lp["edge_w"][:Fn, :].astype(jnp.bfloat16)
    we_e = lp["edge_w"][Fn:, :].astype(jnp.bfloat16)
    wn_u = lp["node_w"][:H, :].astype(jnp.bfloat16)
    wn_n = lp["node_w"][H:, :].astype(jnp.bfloat16)
    alpha_e = lp["edge_a"].reshape(1, H).astype(jnp.float32)
    alpha_n = lp["node_a"].reshape(1, H).astype(jnp.float32)

    flops = 2 * E * (Fn + Fe) * H + 2 * N * (H + Fn) * H
    bytes_accessed = (4 * (N * Fn + E * Fe + N * H + E * H)
                      + 2 * ((Fn + Fe) * H + (H + Fn) * H))

    updated_node, updated_edge = pl.pallas_call(
        _graph_layer_kernel,
        out_shape=(jax.ShapeDtypeStruct((N, H), jnp.float32),
                   jax.ShapeDtypeStruct((E, H), jnp.float32)),
        in_specs=[_SMEM, _SMEM] + [_VMEM] * 8,
        out_specs=(_VMEM, _VMEM),
        scratch_shapes=[pltpu.VMEM((E, Fn), jnp.float32),   # gathered sender features
                        pltpu.VMEM((N, H), jnp.float32)],   # scatter-add accumulator
        cost_estimate=pl.CostEstimate(flops=flops, transcendentals=0,
                                      bytes_accessed=bytes_accessed),
    )(senders, receivers,
      node_feats.astype(jnp.float32), edge_feats.astype(jnp.float32),
      we_n, we_e, alpha_e, wn_u, wn_n, alpha_n)
    return updated_node, updated_edge


# ----------------------------------------------------------------------------
# Fused readout head: pooling (index_add_ over batch) -> fc stack -> output Linear
# ----------------------------------------------------------------------------
def _readout_kernel(batch_ref,                    # SMEM int32 (N,)
                    node_ref,                     # VMEM (N, H) f32
                    fcw_ref, fcb_ref, fca_ref,    # (L,H,H) bf16, (L,1,H) f32, (L,1,H) f32
                    ow_ref, ob_ref,               # (H,O) bf16, (1,O) f32
                    out_ref,                      # (G, O) f32
                    u_scr):                       # VMEM scratch (G, H) f32
    n_nodes = node_ref.shape[0]
    n_fc = fcw_ref.shape[0]

    # Graph pooling: u[batch[i], :] += node[i, :]
    u_scr[...] = jnp.zeros_like(u_scr)

    def pool_body(i, carry):
        g = batch_ref[i]
        u_scr[pl.ds(g, 1), :] = u_scr[pl.ds(g, 1), :] + node_ref[pl.ds(i, 1), :]
        return carry
    lax.fori_loop(0, n_nodes, pool_body, 0)

    # FC stack (statically unrolled; all weights resident in VMEM).
    h = u_scr[...]
    for l in range(n_fc):
        y = jnp.dot(h.astype(jnp.bfloat16), fcw_ref[l],
                    preferred_element_type=jnp.float32) + fcb_ref[l]
        h = jnp.where(y > 0, y, fca_ref[l] * y)
        # TODO(synk): Dropout(p=0.1) -- identity in eval mode.

    # Output layer (no activation).
    out_ref[...] = jnp.dot(h.astype(jnp.bfloat16), ow_ref[...],
                           preferred_element_type=jnp.float32) + ob_ref[...]


def readout_forward(params, node_feats, batch, num_graphs):
    N, H = node_feats.shape
    fcw = jnp.stack([fp["w"] for fp in params["fc_layers"]]).astype(jnp.bfloat16)
    fcb = jnp.stack([fp["b"].reshape(1, H) for fp in params["fc_layers"]]).astype(jnp.float32)
    fca = jnp.stack([fp["a"].reshape(1, H) for fp in params["fc_layers"]]).astype(jnp.float32)
    ow = params["out_w"].astype(jnp.bfloat16)
    O = params["out_w"].shape[1]
    ob = params["out_b"].reshape(1, O).astype(jnp.float32)
    L = len(params["fc_layers"])

    flops = 2 * num_graphs * H * H * L + 2 * num_graphs * H * O
    bytes_accessed = 4 * (N * H + num_graphs * O) + 2 * (L * H * H + H * O)

    return pl.pallas_call(
        _readout_kernel,
        out_shape=jax.ShapeDtypeStruct((num_graphs, O), jnp.float32),
        in_specs=[_SMEM] + [_VMEM] * 6,
        out_specs=_VMEM,
        scratch_shapes=[pltpu.VMEM((num_graphs, H), jnp.float32)],
        cost_estimate=pl.CostEstimate(flops=flops, transcendentals=0,
                                      bytes_accessed=bytes_accessed),
    )(batch, node_feats.astype(jnp.float32), fcw, fcb, fca, ow, ob)


# ----------------------------------------------------------------------------
# Parameter initialization (deterministic, torch-like defaults)
# ----------------------------------------------------------------------------
def _linear_init(key, in_f, out_f, bias):
    kw, kb = jax.random.split(key)
    bound = 1.0 / float(in_f) ** 0.5
    w = jax.random.uniform(kw, (in_f, out_f), jnp.float32, -bound, bound)
    b = (jax.random.uniform(kb, (out_f,), jnp.float32, -bound, bound)
         if bias else jnp.zeros((out_f,), jnp.float32))
    return w, b


def init_params(key, hidden_size, output_size=1, graph_depth=3, fc_depth=3):
    params = {"graph_layers": [], "fc_layers": []}
    node_dims = [NODE_FEATURES] + [hidden_size] * (graph_depth - 1)
    edge_dims = [EDGE_FEATURES] + [hidden_size] * (graph_depth - 1)
    keys = jax.random.split(key, graph_depth * 2 + fc_depth + 1)
    ki = 0
    for nf, ef in zip(node_dims, edge_dims):
        ew, _ = _linear_init(keys[ki], ef + nf, hidden_size, bias=False); ki += 1
        nw, _ = _linear_init(keys[ki], hidden_size + nf, hidden_size, bias=False); ki += 1
        params["graph_layers"].append({
            "edge_w": ew,
            "edge_a": jnp.full((hidden_size,), 0.25, jnp.float32),   # PReLU default
            "node_w": nw,
            "node_a": jnp.full((hidden_size,), 0.25, jnp.float32),
        })
    for _ in range(fc_depth):
        w, b = _linear_init(keys[ki], hidden_size, hidden_size, bias=True); ki += 1
        params["fc_layers"].append({
            "w": w, "b": b, "a": jnp.full((hidden_size,), 0.25, jnp.float32)})
    ow, ob = _linear_init(keys[ki], hidden_size, output_size, bias=True)
    params["out_w"] = ow
    params["out_b"] = ob
    return params


# ----------------------------------------------------------------------------
# Forward pass
# ----------------------------------------------------------------------------
def graph_network_forward(params, node_feats, edge_feats, edge_index, batch, num_graphs):
    receivers = edge_index[0].astype(jnp.int32)
    senders = edge_index[1].astype(jnp.int32)
    n, e = node_feats, edge_feats
    for lp in params["graph_layers"]:
        n, e = graph_layer_forward(lp, n, e, senders, receivers)
    return readout_forward(params, n, batch.astype(jnp.int32), num_graphs)


# Pure-JAX reference (mirrors the PyTorch module) for a correctness check.
def _reference_forward(params, node_feats, edge_feats, edge_index, batch, num_graphs):
    def prelu(x, a):
        return jnp.where(x > 0, x, a * x)
    receivers, senders = edge_index[0], edge_index[1]
    n, e = node_feats, edge_feats
    for lp in params["graph_layers"]:
        e = prelu(jnp.concatenate([n[senders], e], axis=-1) @ lp["edge_w"], lp["edge_a"])
        upd = jnp.zeros((n.shape[0], e.shape[-1]), jnp.float32).at[receivers].add(e)
        n = prelu(jnp.concatenate([upd, n], axis=-1) @ lp["node_w"], lp["node_a"])
    u = jnp.zeros((num_graphs, n.shape[-1]), jnp.float32).at[batch].add(n)
    for fp in params["fc_layers"]:
        u = prelu(u @ fp["w"] + fp["b"], fp["a"])
    return u @ params["out_w"] + params["out_b"]


# ----------------------------------------------------------------------------
# Demo
# ----------------------------------------------------------------------------
if __name__ == "__main__":
    key = jax.random.PRNGKey(0)
    k_param, k_n, k_e, k_ei = jax.random.split(key, 4)

    hidden_size = 32
    num_nodes = 8
    num_edges = 16
    num_graphs = 2

    params = init_params(k_param, hidden_size, output_size=1,
                         graph_depth=3, fc_depth=3)

    node_feats = jax.random.normal(k_n, (num_nodes, NODE_FEATURES), jnp.float32)
    edge_feats = jax.random.normal(k_e, (num_edges, EDGE_FEATURES), jnp.float32)
    edge_index = jax.random.randint(k_ei, (2, num_edges), 0, num_nodes, jnp.int32)
    batch = jnp.concatenate([
        jnp.zeros((num_nodes // 2,), jnp.int32),
        jnp.ones((num_nodes - num_nodes // 2,), jnp.int32),
    ])

    fwd = jax.jit(graph_network_forward, static_argnums=(5,))
    logits = fwd(params, node_feats, edge_feats, edge_index, batch, num_graphs)
    logits = jax.block_until_ready(logits)

    assert logits.shape == (num_graphs, 1)
    assert bool(jnp.all(jnp.isfinite(logits)))

    ref = _reference_forward(params, node_feats, edge_feats, edge_index,
                             batch, num_graphs)
    # bf16 MXU operands vs f32 reference: allow generous tolerance.
    assert bool(jnp.allclose(logits, ref, atol=1e-1, rtol=1e-1)), (logits, ref)

    print("KERNEL_OK")
</pallas_src>

<mosaic_0001>
module attributes {stable_mosaic.version = 11 : i64} {
  func.func @_graph_layer_kernel(%arg0: memref<16xi32, #tpu.memory_space<smem>>, %arg1: memref<16xi32, #tpu.memory_space<smem>>, %arg2: memref<8x39xf32, #tpu.memory_space<vmem>>, %arg3: memref<16x10xf32, #tpu.memory_space<vmem>>, %arg4: memref<39x32xbf16, #tpu.memory_space<vmem>>, %arg5: memref<10x32xbf16, #tpu.memory_space<vmem>>, %arg6: memref<1x32xf32, #tpu.memory_space<vmem>>, %arg7: memref<32x32xbf16, #tpu.memory_space<vmem>>, %arg8: memref<39x32xbf16, #tpu.memory_space<vmem>>, %arg9: memref<1x32xf32, #tpu.memory_space<vmem>>, %arg10: memref<8x32xf32, #tpu.memory_space<vmem>>, %arg11: memref<16x32xf32, #tpu.memory_space<vmem>>, %arg12: memref<16x39xf32, #tpu.memory_space<vmem>>, %arg13: memref<8x32xf32, #tpu.memory_space<vmem>>) attributes {dimension_semantics = [], scalar_prefetch = 0 : i64, scratch_operands = 2 : i64, tpu.core_type = #tpu.core_type<tc>} {
    %c0_i32 = arith.constant 0 : i32
    %c16_i32 = arith.constant 16 : i32
    %0 = arith.addi %c0_i32, %c16_i32 : i32
    %c1_i32 = arith.constant 1 : i32
    scf.for %arg14 = %c0_i32 to %0 step %c1_i32  : i32 {
      %36 = arith.index_cast %arg14 : i32 to index
      %37 = memref.load %arg0[%36] : memref<16xi32, #tpu.memory_space<smem>>
      %38 = arith.index_cast %37 : i32 to index
      %c0_36 = arith.constant 0 : index
      %39 = vector.load %arg2[%38, %c0_36] : memref<8x39xf32, #tpu.memory_space<vmem>>, vector<1x39xf32>
      %40 = arith.index_cast %arg14 : i32 to index
      %c0_37 = arith.constant 0 : index
      %41 = vector.load %arg12[%40, %c0_37] : memref<16x39xf32, #tpu.memory_space<vmem>>, vector<1x39xf32>
      tpu.vector_store %arg12[%40, %c0_37], %39 {strides = array<i32>} : memref<16x39xf32, #tpu.memory_space<vmem>>, vector<1x39xf32>,
    }
    %c16_i32_0 = arith.constant 16 : i32
    %c0 = arith.constant 0 : index
    %c0_1 = arith.constant 0 : index
    %1 = vector.load %arg12[%c0, %c0_1] : memref<16x39xf32, #tpu.memory_space<vmem>>, vector<16x39xf32>
    %2 = arith.truncf %1 : vector<16x39xf32> to vector<16x39xbf16>
    %c0_2 = arith.constant 0 : index
    %c0_3 = arith.constant 0 : index
    %3 = vector.load %arg4[%c0_2, %c0_3] : memref<39x32xbf16, #tpu.memory_space<vmem>>, vector<39x32xbf16>
    %cst = arith.constant dense<0.000000e+00> : vector<16x32xf32>
    %4 = tpu.matmul %2, %3, %cst {dimension_numbers = #tpu.dot_dimension_numbers<[1], [0], [0], [1], [0, 0, 1, 1], [], []>} : vector<16x39xbf16>, vector<39x32xbf16>, vector<16x32xf32> -> vector<16x32xf32>
    %c0_4 = arith.constant 0 : index
    %c0_5 = arith.constant 0 : index
    %5 = vector.load %arg3[%c0_4, %c0_5] : memref<16x10xf32, #tpu.memory_space<vmem>>, vector<16x10xf32>
    %6 = arith.truncf %5 : vector<16x10xf32> to vector<16x10xbf16>
    %c0_6 = arith.constant 0 : index
    %c0_7 = arith.constant 0 : index
    %7 = vector.load %arg5[%c0_6, %c0_7] : memref<10x32xbf16, #tpu.memory_space<vmem>>, vector<10x32xbf16>
    %cst_8 = arith.constant dense<0.000000e+00> : vector<16x32xf32>
    %8 = tpu.matmul %6, %7, %cst_8 {dimension_numbers = #tpu.dot_dimension_numbers<[1], [0], [0], [1], [0, 0, 1, 1], [], []>} : vector<16x10xbf16>, vector<10x32xbf16>, vector<16x32xf32> -> vector<16x32xf32>
    %9 = arith.addf %4, %8 : vector<16x32xf32>
    %cst_9 = arith.constant 0.000000e+00 : f32
    %10 = vector.broadcast %cst_9 : f32 to vector<16x32xf32>
    %11 = arith.cmpf ogt, %9, %10 : vector<16x32xf32>
    %c0_10 = arith.constant 0 : index
    %c0_11 = arith.constant 0 : index
    %12 = vector.load %arg6[%c0_10, %c0_11] : memref<1x32xf32, #tpu.memory_space<vmem>>, vector<1x32xf32>
    %13 = vector.broadcast %12 : vector<1x32xf32> to vector<16x32xf32>
    %14 = arith.mulf %13, %9 : vector<16x32xf32>
    %15 = arith.select %11, %9, %14 : vector<16x32xi1>, vector<16x32xf32>
    %c0_12 = arith.constant 0 : index
    %c0_13 = arith.constant 0 : index
    %16 = vector.load %arg11[%c0_12, %c0_13] : memref<16x32xf32, #tpu.memory_space<vmem>>, vector<16x32xf32>
    tpu.vector_store %arg11[%c0_12, %c0_13], %15 {strides = array<i32>} : memref<16x32xf32, #tpu.memory_space<vmem>>, vector<16x32xf32>,
    %cst_14 = arith.constant 0.000000e+00 : f32
    %17 = vector.broadcast %cst_14 : f32 to vector<8x32xf32>
    %c0_15 = arith.constant 0 : index
    %c0_16 = arith.constant 0 : index
    %18 = vector.load %arg13[%c0_15, %c0_16] : memref<8x32xf32, #tpu.memory_space<vmem>>, vector<8x32xf32>
    tpu.vector_store %arg13[%c0_15, %c0_16], %17 {strides = array<i32>} : memref<8x32xf32, #tpu.memory_space<vmem>>, vector<8x32xf32>,
    %c0_i32_17 = arith.constant 0 : i32
    %c16_i32_18 = arith.constant 16 : i32
    %19 = arith.addi %c0_i32_17, %c16_i32_18 : i32
    %c1_i32_19 = arith.constant 1 : i32
    scf.for %arg14 = %c0_i32_17 to %19 step %c1_i32_19  : i32 {
      %36 = arith.index_cast %arg14 : i32 to index
      %37 = memref.load %arg1[%36] : memref<16xi32, #tpu.memory_space<smem>>
      %38 = arith.index_cast %37 : i32 to index
      %c0_36 = arith.constant 0 : index
      %39 = vector.load %arg13[%38, %c0_36] : memref<8x32xf32, #tpu.memory_space<vmem>>, vector<1x32xf32>
      %40 = arith.index_cast %arg14 : i32 to index
      %c0_37 = arith.constant 0 : index
      %41 = vector.load %arg11[%40, %c0_37] : memref<16x32xf32, #tpu.memory_space<vmem>>, vector<1x32xf32>
      %42 = arith.addf %39, %41 : vector<1x32xf32>
      %43 = arith.index_cast %37 : i32 to index
      %c0_38 = arith.constant 0 : index
      %44 = vector.load %arg13[%43, %c0_38] : memref<8x32xf32, #tpu.memory_space<vmem>>, vector<1x32xf32>
      tpu.vector_store %arg13[%43, %c0_38], %42 {strides = array<i32>} : memref<8x32xf32, #tpu.memory_space<vmem>>, vector<1x32xf32>,
    }
    %c16_i32_20 = arith.constant 16 : i32
    %c0_21 = arith.constant 0 : index
    %c0_22 = arith.constant 0 : index
    %20 = vector.load %arg13[%c0_21, %c0_22] : memref<8x32xf32, #tpu.memory_space<vmem>>, vector<8x32xf32>
    %21 = arith.truncf %20 : vector<8x32xf32> to vector<8x32xbf16>
    %c0_23 = arith.constant 0 : index
    %c0_24 = arith.constant 0 : index
    %22 = vector.load %arg7[%c0_23, %c0_24] : memref<32x32xbf16, #tpu.memory_space<vmem>>, vector<32x32xbf16>
    %cst_25 = arith.constant dense<0.000000e+00> : vector<8x32xf32>
    %23 = tpu.matmul %21, %22, %cst_25 {dimension_numbers = #tpu.dot_dimension_numbers<[1], [0], [0], [1], [0, 0, 1, 1], [], []>} : vector<8x32xbf16>, vector<32x32xbf16>, vector<8x32xf32> -> vector<8x32xf32>
    %c0_26 = arith.constant 0 : index
    %c0_27 = arith.constant 0 : index
    %24 = vector.load %arg2[%c0_26, %c0_27] : memref<8x39xf32, #tpu.memory_space<vmem>>, vector<8x39xf32>
    %25 = arith.truncf %24 : vector<8x39xf32> to vector<8x39xbf16>
    %c0_28 = arith.constant 0 : index
    %c0_29 = arith.constant 0 : index
    %26 = vector.load %arg8[%c0_28, %c0_29] : memref<39x32xbf16, #tpu.memory_space<vmem>>, vector<39x32xbf16>
    %cst_30 = arith.constant dense<0.000000e+00> : vector<8x32xf32>
    %27 = tpu.matmul %25, %26, %cst_30 {dimension_numbers = #tpu.dot_dimension_numbers<[1], [0], [0], [1], [0, 0, 1, 1], [], []>} : vector<8x39xbf16>, vector<39x32xbf16>, vector<8x32xf32> -> vector<8x32xf32>
    %28 = arith.addf %23, %27 : vector<8x32xf32>
    %cst_31 = arith.constant 0.000000e+00 : f32
    %29 = vector.broadcast %cst_31 : f32 to vector<8x32xf32>
    %30 = arith.cmpf ogt, %28, %29 : vector<8x32xf32>
    %c0_32 = arith.constant 0 : index
    %c0_33 = arith.constant 0 : index
    %31 = vector.load %arg9[%c0_32, %c0_33] : memref<1x32xf32, #tpu.memory_space<vmem>>, vector<1x32xf32>
    %32 = vector.broadcast %31 : vector<1x32xf32> to vector<8x32xf32>
    %33 = arith.mulf %32, %28 : vector<8x32xf32>
    %34 = arith.select %30, %28, %33 : vector<8x32xi1>, vector<8x32xf32>
    %c0_34 = arith.constant 0 : index
    %c0_35 = arith.constant 0 : index
    %35 = vector.load %arg10[%c0_34, %c0_35] : memref<8x32xf32, #tpu.memory_space<vmem>>, vector<8x32xf32>
    tpu.vector_store %arg10[%c0_34, %c0_35], %34 {strides = array<i32>} : memref<8x32xf32, #tpu.memory_space<vmem>>, vector<8x32xf32>,
    return
  }
}

module attributes {stable_mosaic.version = 11 : i64} {
  func.func @_graph_layer_kernel(%arg0: memref<16xi32, #tpu.memory_space<smem>>, %arg1: memref<16xi32, #tpu.memory_space<smem>>, %arg2: memref<8x32xf32, #tpu.memory_space<vmem>>, %arg3: memref<16x32xf32, #tpu.memory_space<vmem>>, %arg4: memref<32x32xbf16, #tpu.memory_space<vmem>>, %arg5: memref<32x32xbf16, #tpu.memory_space<vmem>>, %arg6: memref<1x32xf32, #tpu.memory_space<vmem>>, %arg7: memref<32x32xbf16, #tpu.memory_space<vmem>>, %arg8: memref<32x32xbf16, #tpu.memory_space<vmem>>, %arg9: memref<1x32xf32, #tpu.memory_space<vmem>>, %arg10: memref<8x32xf32, #tpu.memory_space<vmem>>, %arg11: memref<16x32xf32, #tpu.memory_space<vmem>>, %arg12: memref<16x32xf32, #tpu.memory_space<vmem>>, %arg13: memref<8x32xf32, #tpu.memory_space<vmem>>) attributes {dimension_semantics = [], scalar_prefetch = 0 : i64, scratch_operands = 2 : i64, tpu.core_type = #tpu.core_type<tc>} {
    %c0_i32 = arith.constant 0 : i32
    %c16_i32 = arith.constant 16 : i32
    %0 = arith.addi %c0_i32, %c16_i32 : i32
    %c1_i32 = arith.constant 1 : i32
    scf.for %arg14 = %c0_i32 to %0 step %c1_i32  : i32 {
      %36 = arith.index_cast %arg14 : i32 to index
      %37 = memref.load %arg0[%36] : memref<16xi32, #tpu.memory_space<smem>>
      %38 = arith.index_cast %37 : i32 to index
      %c0_36 = arith.constant 0 : index
      %39 = vector.load %arg2[%38, %c0_36] : memref<8x32xf32, #tpu.memory_space<vmem>>, vector<1x32xf32>
      %40 = arith.index_cast %arg14 : i32 to index
      %c0_37 = arith.constant 0 : index
      %41 = vector.load %arg12[%40, %c0_37] : memref<16x32xf32, #tpu.memory_space<vmem>>, vector<1x32xf32>
      tpu.vector_store %arg12[%40, %c0_37], %39 {strides = array<i32>} : memref<16x32xf32, #tpu.memory_space<vmem>>, vector<1x32xf32>,
    }
    %c16_i32_0 = arith.constant 16 : i32
    %c0 = arith.constant 0 : index
    %c0_1 = arith.constant 0 : index
    %1 = vector.load %arg12[%c0, %c0_1] : memref<16x32xf32, #tpu.memory_space<vmem>>, vector<16x32xf32>
    %2 = arith.truncf %1 : vector<16x32xf32> to vector<16x32xbf16>
    %c0_2 = arith.constant 0 : index
    %c0_3 = arith.constant 0 : index
    %3 = vector.load %arg4[%c0_2, %c0_3] : memref<32x32xbf16, #tpu.memory_space<vmem>>, vector<32x32xbf16>
    %cst = arith.constant dense<0.000000e+00> : vector<16x32xf32>
    %4 = tpu.matmul %2, %3, %cst {dimension_numbers = #tpu.dot_dimension_numbers<[1], [0], [0], [1], [0, 0, 1, 1], [], []>} : vector<16x32xbf16>, vector<32x32xbf16>, vector<16x32xf32> -> vector<16x32xf32>
    %c0_4 = arith.constant 0 : index
    %c0_5 = arith.constant 0 : index
    %5 = vector.load %arg3[%c0_4, %c0_5] : memref<16x32xf32, #tpu.memory_space<vmem>>, vector<16x32xf32>
    %6 = arith.truncf %5 : vector<16x32xf32> to vector<16x32xbf16>
    %c0_6 = arith.constant 0 : index
    %c0_7 = arith.constant 0 : index
    %7 = vector.load %arg5[%c0_6, %c0_7] : memref<32x32xbf16, #tpu.memory_space<vmem>>, vector<32x32xbf16>
    %cst_8 = arith.constant dense<0.000000e+00> : vector<16x32xf32>
    %8 = tpu.matmul %6, %7, %cst_8 {dimension_numbers = #tpu.dot_dimension_numbers<[1], [0], [0], [1], [0, 0, 1, 1], [], []>} : vector<16x32xbf16>, vector<32x32xbf16>, vector<16x32xf32> -> vector<16x32xf32>
    %9 = arith.addf %4, %8 : vector<16x32xf32>
    %cst_9 = arith.constant 0.000000e+00 : f32
    %10 = vector.broadcast %cst_9 : f32 to vector<16x32xf32>
    %11 = arith.cmpf ogt, %9, %10 : vector<16x32xf32>
    %c0_10 = arith.constant 0 : index
    %c0_11 = arith.constant 0 : index
    %12 = vector.load %arg6[%c0_10, %c0_11] : memref<1x32xf32, #tpu.memory_space<vmem>>, vector<1x32xf32>
    %13 = vector.broadcast %12 : vector<1x32xf32> to vector<16x32xf32>
    %14 = arith.mulf %13, %9 : vector<16x32xf32>
    %15 = arith.select %11, %9, %14 : vector<16x32xi1>, vector<16x32xf32>
    %c0_12 = arith.constant 0 : index
    %c0_13 = arith.constant 0 : index
    %16 = vector.load %arg11[%c0_12, %c0_13] : memref<16x32xf32, #tpu.memory_space<vmem>>, vector<16x32xf32>
    tpu.vector_store %arg11[%c0_12, %c0_13], %15 {strides = array<i32>} : memref<16x32xf32, #tpu.memory_space<vmem>>, vector<16x32xf32>,
    %cst_14 = arith.constant 0.000000e+00 : f32
    %17 = vector.broadcast %cst_14 : f32 to vector<8x32xf32>
    %c0_15 = arith.constant 0 : index
    %c0_16 = arith.constant 0 : index
    %18 = vector.load %arg13[%c0_15, %c0_16] : memref<8x32xf32, #tpu.memory_space<vmem>>, vector<8x32xf32>
    tpu.vector_store %arg13[%c0_15, %c0_16], %17 {strides = array<i32>} : memref<8x32xf32, #tpu.memory_space<vmem>>, vector<8x32xf32>,
    %c0_i32_17 = arith.constant 0 : i32
    %c16_i32_18 = arith.constant 16 : i32
    %19 = arith.addi %c0_i32_17, %c16_i32_18 : i32
    %c1_i32_19 = arith.constant 1 : i32
    scf.for %arg14 = %c0_i32_17 to %19 step %c1_i32_19  : i32 {
      %36 = arith.index_cast %arg14 : i32 to index
      %37 = memref.load %arg1[%36] : memref<16xi32, #tpu.memory_space<smem>>
      %38 = arith.index_cast %37 : i32 to index
      %c0_36 = arith.constant 0 : index
      %39 = vector.load %arg13[%38, %c0_36] : memref<8x32xf32, #tpu.memory_space<vmem>>, vector<1x32xf32>
      %40 = arith.index_cast %arg14 : i32 to index
      %c0_37 = arith.constant 0 : index
      %41 = vector.load %arg11[%40, %c0_37] : memref<16x32xf32, #tpu.memory_space<vmem>>, vector<1x32xf32>
      %42 = arith.addf %39, %41 : vector<1x32xf32>
      %43 = arith.index_cast %37 : i32 to index
      %c0_38 = arith.constant 0 : index
      %44 = vector.load %arg13[%43, %c0_38] : memref<8x32xf32, #tpu.memory_space<vmem>>, vector<1x32xf32>
      tpu.vector_store %arg13[%43, %c0_38], %42 {strides = array<i32>} : memref<8x32xf32, #tpu.memory_space<vmem>>, vector<1x32xf32>,
    }
    %c16_i32_20 = arith.constant 16 : i32
    %c0_21 = arith.constant 0 : index
    %c0_22 = arith.constant 0 : index
    %20 = vector.load %arg13[%c0_21, %c0_22] : memref<8x32xf32, #tpu.memory_space<vmem>>, vector<8x32xf32>
    %21 = arith.truncf %20 : vector<8x32xf32> to vector<8x32xbf16>
    %c0_23 = arith.constant 0 : index
    %c0_24 = arith.constant 0 : index
    %22 = vector.load %arg7[%c0_23, %c0_24] : memref<32x32xbf16, #tpu.memory_space<vmem>>, vector<32x32xbf16>
    %cst_25 = arith.constant dense<0.000000e+00> : vector<8x32xf32>
    %23 = tpu.matmul %21, %22, %cst_25 {dimension_numbers = #tpu.dot_dimension_numbers<[1], [0], [0], [1], [0, 0, 1, 1], [], []>} : vector<8x32xbf16>, vector<32x32xbf16>, vector<8x32xf32> -> vector<8x32xf32>
    %c0_26 = arith.constant 0 : index
    %c0_27 = arith.constant 0 : index
    %24 = vector.load %arg2[%c0_26, %c0_27] : memref<8x32xf32, #tpu.memory_space<vmem>>, vector<8x32xf32>
    %25 = arith.truncf %24 : vector<8x32xf32> to vector<8x32xbf16>
    %c0_28 = arith.constant 0 : index
    %c0_29 = arith.constant 0 : index
    %26 = vector.load %arg8[%c0_28, %c0_29] : memref<32x32xbf16, #tpu.memory_space<vmem>>, vector<32x32xbf16>
    %cst_30 = arith.constant dense<0.000000e+00> : vector<8x32xf32>
    %27 = tpu.matmul %25, %26, %cst_30 {dimension_numbers = #tpu.dot_dimension_numbers<[1], [0], [0], [1], [0, 0, 1, 1], [], []>} : vector<8x32xbf16>, vector<32x32xbf16>, vector<8x32xf32> -> vector<8x32xf32>
    %28 = arith.addf %23, %27 : vector<8x32xf32>
    %cst_31 = arith.constant 0.000000e+00 : f32
    %29 = vector.broadcast %cst_31 : f32 to vector<8x32xf32>
    %30 = arith.cmpf ogt, %28, %29 : vector<8x32xf32>
    %c0_32 = arith.constant 0 : index
    %c0_33 = arith.constant 0 : index
    %31 = vector.load %arg9[%c0_32, %c0_33] : memref<1x32xf32, #tpu.memory_space<vmem>>, vector<1x32xf32>
    %32 = vector.broadcast %31 : vector<1x32xf32> to vector<8x32xf32>
    %33 = arith.mulf %32, %28 : vector<8x32xf32>
    %34 = arith.select %30, %28, %33 : vector<8x32xi1>, vector<8x32xf32>
    %c0_34 = arith.constant 0 : index
    %c0_35 = arith.constant 0 : index
    %35 = vector.load %arg10[%c0_34, %c0_35] : memref<8x32xf32, #tpu.memory_space<vmem>>, vector<8x32xf32>
    tpu.vector_store %arg10[%c0_34, %c0_35], %34 {strides = array<i32>} : memref<8x32xf32, #tpu.memory_space<vmem>>, vector<8x32xf32>,
    return
  }
}

module attributes {stable_mosaic.version = 11 : i64} {
  func.func @_graph_layer_kernel(%arg0: memref<16xi32, #tpu.memory_space<smem>>, %arg1: memref<16xi32, #tpu.memory_space<smem>>, %arg2: memref<8x32xf32, #tpu.memory_space<vmem>>, %arg3: memref<16x32xf32, #tpu.memory_space<vmem>>, %arg4: memref<32x32xbf16, #tpu.memory_space<vmem>>, %arg5: memref<32x32xbf16, #tpu.memory_space<vmem>>, %arg6: memref<1x32xf32, #tpu.memory_space<vmem>>, %arg7: memref<32x32xbf16, #tpu.memory_space<vmem>>, %arg8: memref<32x32xbf16, #tpu.memory_space<vmem>>, %arg9: memref<1x32xf32, #tpu.memory_space<vmem>>, %arg10: memref<8x32xf32, #tpu.memory_space<vmem>>, %arg11: memref<16x32xf32, #tpu.memory_space<vmem>>, %arg12: memref<16x32xf32, #tpu.memory_space<vmem>>, %arg13: memref<8x32xf32, #tpu.memory_space<vmem>>) attributes {dimension_semantics = [], scalar_prefetch = 0 : i64, scratch_operands = 2 : i64, tpu.core_type = #tpu.core_type<tc>} {
    %c0_i32 = arith.constant 0 : i32
    %c16_i32 = arith.constant 16 : i32
    %0 = arith.addi %c0_i32, %c16_i32 : i32
    %c1_i32 = arith.constant 1 : i32
    scf.for %arg14 = %c0_i32 to %0 step %c1_i32  : i32 {
      %36 = arith.index_cast %arg14 : i32 to index
      %37 = memref.load %arg0[%36] : memref<16xi32, #tpu.memory_space<smem>>
      %38 = arith.index_cast %37 : i32 to index
      %c0_36 = arith.constant 0 : index
      %39 = vector.load %arg2[%38, %c0_36] : memref<8x32xf32, #tpu.memory_space<vmem>>, vector<1x32xf32>
      %40 = arith.index_cast %arg14 : i32 to index
      %c0_37 = arith.constant 0 : index
      %41 = vector.load %arg12[%40, %c0_37] : memref<16x32xf32, #tpu.memory_space<vmem>>, vector<1x32xf32>
      tpu.vector_store %arg12[%40, %c0_37], %39 {strides = array<i32>} : memref<16x32xf32, #tpu.memory_space<vmem>>, vector<1x32xf32>,
    }
    %c16_i32_0 = arith.constant 16 : i32
    %c0 = arith.constant 0 : index
    %c0_1 = arith.constant 0 : index
    %1 = vector.load %arg12[%c0, %c0_1] : memref<16x32xf32, #tpu.memory_space<vmem>>, vector<16x32xf32>
    %2 = arith.truncf %1 : vector<16x32xf32> to vector<16x32xbf16>
    %c0_2 = arith.constant 0 : index
    %c0_3 = arith.constant 0 : index
    %3 = vector.load %arg4[%c0_2, %c0_3] : memref<32x32xbf16, #tpu.memory_space<vmem>>, vector<32x32xbf16>
    %cst = arith.constant dense<0.000000e+00> : vector<16x32xf32>
    %4 = tpu.matmul %2, %3, %cst {dimension_numbers = #tpu.dot_dimension_numbers<[1], [0], [0], [1], [0, 0, 1, 1], [], []>} : vector<16x32xbf16>, vector<32x32xbf16>, vector<16x32xf32> -> vector<16x32xf32>
    %c0_4 = arith.constant 0 : index
    %c0_5 = arith.constant 0 : index
    %5 = vector.load %arg3[%c0_4, %c0_5] : memref<16x32xf32, #tpu.memory_space<vmem>>, vector<16x32xf32>
    %6 = arith.truncf %5 : vector<16x32xf32> to vector<16x32xbf16>
    %c0_6 = arith.constant 0 : index
    %c0_7 = arith.constant 0 : index
    %7 = vector.load %arg5[%c0_6, %c0_7] : memref<32x32xbf16, #tpu.memory_space<vmem>>, vector<32x32xbf16>
    %cst_8 = arith.constant dense<0.000000e+00> : vector<16x32xf32>
    %8 = tpu.matmul %6, %7, %cst_8 {dimension_numbers = #tpu.dot_dimension_numbers<[1], [0], [0], [1], [0, 0, 1, 1], [], []>} : vector<16x32xbf16>, vector<32x32xbf16>, vector<16x32xf32> -> vector<16x32xf32>
    %9 = arith.addf %4, %8 : vector<16x32xf32>
    %cst_9 = arith.constant 0.000000e+00 : f32
    %10 = vector.broadcast %cst_9 : f32 to vector<16x32xf32>
    %11 = arith.cmpf ogt, %9, %10 : vector<16x32xf32>
    %c0_10 = arith.constant 0 : index
    %c0_11 = arith.constant 0 : index
    %12 = vector.load %arg6[%c0_10, %c0_11] : memref<1x32xf32, #tpu.memory_space<vmem>>, vector<1x32xf32>
    %13 = vector.broadcast %12 : vector<1x32xf32> to vector<16x32xf32>
    %14 = arith.mulf %13, %9 : vector<16x32xf32>
    %15 = arith.select %11, %9, %14 : vector<16x32xi1>, vector<16x32xf32>
    %c0_12 = arith.constant 0 : index
    %c0_13 = arith.constant 0 : index
    %16 = vector.load %arg11[%c0_12, %c0_13] : memref<16x32xf32, #tpu.memory_space<vmem>>, vector<16x32xf32>
    tpu.vector_store %arg11[%c0_12, %c0_13], %15 {strides = array<i32>} : memref<16x32xf32, #tpu.memory_space<vmem>>, vector<16x32xf32>,
    %cst_14 = arith.constant 0.000000e+00 : f32
    %17 = vector.broadcast %cst_14 : f32 to vector<8x32xf32>
    %c0_15 = arith.constant 0 : index
    %c0_16 = arith.constant 0 : index
    %18 = vector.load %arg13[%c0_15, %c0_16] : memref<8x32xf32, #tpu.memory_space<vmem>>, vector<8x32xf32>
    tpu.vector_store %arg13[%c0_15, %c0_16], %17 {strides = array<i32>} : memref<8x32xf32, #tpu.memory_space<vmem>>, vector<8x32xf32>,
    %c0_i32_17 = arith.constant 0 : i32
    %c16_i32_18 = arith.constant 16 : i32
    %19 = arith.addi %c0_i32_17, %c16_i32_18 : i32
    %c1_i32_19 = arith.constant 1 : i32
    scf.for %arg14 = %c0_i32_17 to %19 step %c1_i32_19  : i32 {
      %36 = arith.index_cast %arg14 : i32 to index
      %37 = memref.load %arg1[%36] : memref<16xi32, #tpu.memory_space<smem>>
      %38 = arith.index_cast %37 : i32 to index
      %c0_36 = arith.constant 0 : index
      %39 = vector.load %arg13[%38, %c0_36] : memref<8x32xf32, #tpu.memory_space<vmem>>, vector<1x32xf32>
      %40 = arith.index_cast %arg14 : i32 to index
      %c0_37 = arith.constant 0 : index
      %41 = vector.load %arg11[%40, %c0_37] : memref<16x32xf32, #tpu.memory_space<vmem>>, vector<1x32xf32>
      %42 = arith.addf %39, %41 : vector<1x32xf32>
      %43 = arith.index_cast %37 : i32 to index
      %c0_38 = arith.constant 0 : index
      %44 = vector.load %arg13[%43, %c0_38] : memref<8x32xf32, #tpu.memory_space<vmem>>, vector<1x32xf32>
      tpu.vector_store %arg13[%43, %c0_38], %42 {strides = array<i32>} : memref<8x32xf32, #tpu.memory_space<vmem>>, vector<1x32xf32>,
    }
    %c16_i32_20 = arith.constant 16 : i32
    %c0_21 = arith.constant 0 : index
    %c0_22 = arith.constant 0 : index
    %20 = vector.load %arg13[%c0_21, %c0_22] : memref<8x32xf32, #tpu.memory_space<vmem>>, vector<8x32xf32>
    %21 = arith.truncf %20 : vector<8x32xf32> to vector<8x32xbf16>
    %c0_23 = arith.constant 0 : index
    %c0_24 = arith.constant 0 : index
    %22 = vector.load %arg7[%c0_23, %c0_24] : memref<32x32xbf16, #tpu.memory_space<vmem>>, vector<32x32xbf16>
    %cst_25 = arith.constant dense<0.000000e+00> : vector<8x32xf32>
    %23 = tpu.matmul %21, %22, %cst_25 {dimension_numbers = #tpu.dot_dimension_numbers<[1], [0], [0], [1], [0, 0, 1, 1], [], []>} : vector<8x32xbf16>, vector<32x32xbf16>, vector<8x32xf32> -> vector<8x32xf32>
    %c0_26 = arith.constant 0 : index
    %c0_27 = arith.constant 0 : index
    %24 = vector.load %arg2[%c0_26, %c0_27] : memref<8x32xf32, #tpu.memory_space<vmem>>, vector<8x32xf32>
    %25 = arith.truncf %24 : vector<8x32xf32> to vector<8x32xbf16>
    %c0_28 = arith.constant 0 : index
    %c0_29 = arith.constant 0 : index
    %26 = vector.load %arg8[%c0_28, %c0_29] : memref<32x32xbf16, #tpu.memory_space<vmem>>, vector<32x32xbf16>
    %cst_30 = arith.constant dense<0.000000e+00> : vector<8x32xf32>
    %27 = tpu.matmul %25, %26, %cst_30 {dimension_numbers = #tpu.dot_dimension_numbers<[1], [0], [0], [1], [0, 0, 1, 1], [], []>} : vector<8x32xbf16>, vector<32x32xbf16>, vector<8x32xf32> -> vector<8x32xf32>
    %28 = arith.addf %23, %27 : vector<8x32xf32>
    %cst_31 = arith.constant 0.000000e+00 : f32
    %29 = vector.broadcast %cst_31 : f32 to vector<8x32xf32>
    %30 = arith.cmpf ogt, %28, %29 : vector<8x32xf32>
    %c0_32 = arith.constant 0 : index
    %c0_33 = arith.constant 0 : index
    %31 = vector.load %arg9[%c0_32, %c0_33] : memref<1x32xf32, #tpu.memory_space<vmem>>, vector<1x32xf32>
    %32 = vector.broadcast %31 : vector<1x32xf32> to vector<8x32xf32>
    %33 = arith.mulf %32, %28 : vector<8x32xf32>
    %34 = arith.select %30, %28, %33 : vector<8x32xi1>, vector<8x32xf32>
    %c0_34 = arith.constant 0 : index
    %c0_35 = arith.constant 0 : index
    %35 = vector.load %arg10[%c0_34, %c0_35] : memref<8x32xf32, #tpu.memory_space<vmem>>, vector<8x32xf32>
    tpu.vector_store %arg10[%c0_34, %c0_35], %34 {strides = array<i32>} : memref<8x32xf32, #tpu.memory_space<vmem>>, vector<8x32xf32>,
    return
  }
}

module attributes {stable_mosaic.version = 11 : i64} {
  func.func @_readout_kernel(%arg0: memref<8xi32, #tpu.memory_space<smem>>, %arg1: memref<8x32xf32, #tpu.memory_space<vmem>>, %arg2: memref<3x32x32xbf16, #tpu.memory_space<vmem>>, %arg3: memref<3x1x32xf32, #tpu.memory_space<vmem>>, %arg4: memref<3x1x32xf32, #tpu.memory_space<vmem>>, %arg5: memref<32x1xbf16, #tpu.memory_space<vmem>>, %arg6: memref<1x1xf32, #tpu.memory_space<vmem>>, %arg7: memref<2x1xf32, #tpu.memory_space<vmem>>, %arg8: memref<2x32xf32, #tpu.memory_space<vmem>>) attributes {dimension_semantics = [], scalar_prefetch = 0 : i64, scratch_operands = 1 : i64, tpu.core_type = #tpu.core_type<tc>} {
    %cst = arith.constant 0.000000e+00 : f32
    %0 = vector.broadcast %cst : f32 to vector<2x32xf32>
    %c0 = arith.constant 0 : index
    %c0_0 = arith.constant 0 : index
    %1 = vector.load %arg8[%c0, %c0_0] : memref<2x32xf32, #tpu.memory_space<vmem>>, vector<2x32xf32>
    tpu.vector_store %arg8[%c0, %c0_0], %0 {strides = array<i32>} : memref<2x32xf32, #tpu.memory_space<vmem>>, vector<2x32xf32>,
    %c0_i32 = arith.constant 0 : i32
    %c8_i32 = arith.constant 8 : i32
    %2 = arith.addi %c0_i32, %c8_i32 : i32
    %c1_i32 = arith.constant 1 : i32
    scf.for %arg9 = %c0_i32 to %2 step %c1_i32  : i32 {
      %56 = arith.index_cast %arg9 : i32 to index
      %57 = memref.load %arg0[%56] : memref<8xi32, #tpu.memory_space<smem>>
      %58 = arith.index_cast %57 : i32 to index
      %c0_42 = arith.constant 0 : index
      %59 = vector.load %arg8[%58, %c0_42] : memref<2x32xf32, #tpu.memory_space<vmem>>, vector<1x32xf32>
      %60 = arith.index_cast %arg9 : i32 to index
      %c0_43 = arith.constant 0 : index
      %61 = vector.load %arg1[%60, %c0_43] : memref<8x32xf32, #tpu.memory_space<vmem>>, vector<1x32xf32>
      %62 = arith.addf %59, %61 : vector<1x32xf32>
      %63 = arith.index_cast %57 : i32 to index
      %c0_44 = arith.constant 0 : index
      %64 = vector.load %arg8[%63, %c0_44] : memref<2x32xf32, #tpu.memory_space<vmem>>, vector<1x32xf32>
      tpu.vector_store %arg8[%63, %c0_44], %62 {strides = array<i32>} : memref<2x32xf32, #tpu.memory_space<vmem>>, vector<1x32xf32>,
    }
    %c8_i32_1 = arith.constant 8 : i32
    %c0_2 = arith.constant 0 : index
    %c0_3 = arith.constant 0 : index
    %3 = vector.load %arg8[%c0_2, %c0_3] : memref<2x32xf32, #tpu.memory_space<vmem>>, vector<2x32xf32>
    %4 = arith.truncf %3 : vector<2x32xf32> to vector<2x32xbf16>
    %c0_4 = arith.constant 0 : index
    %c0_5 = arith.constant 0 : index
    %c0_6 = arith.constant 0 : index
    %5 = vector.load %arg2[%c0_4, %c0_5, %c0_6] : memref<3x32x32xbf16, #tpu.memory_space<vmem>>, vector<1x32x32xbf16>
    %6 = vector.shape_cast %5 : vector<1x32x32xbf16> to vector<32x32xbf16>
    %cst_7 = arith.constant dense<0.000000e+00> : vector<2x32xf32>
    %7 = tpu.matmul %4, %6, %cst_7 {dimension_numbers = #tpu.dot_dimension_numbers<[1], [0], [0], [1], [0, 0, 1, 1], [], []>} : vector<2x32xbf16>, vector<32x32xbf16>, vector<2x32xf32> -> vector<2x32xf32>
    %c0_8 = arith.constant 0 : index
    %c0_9 = arith.constant 0 : index
    %c0_10 = arith.constant 0 : index
    %8 = vector.load %arg3[%c0_8, %c0_9, %c0_10] : memref<3x1x32xf32, #tpu.memory_space<vmem>>, vector<1x1x32xf32>
    %9 = vector.shape_cast %8 : vector<1x1x32xf32> to vector<1x32xf32>
    %10 = vector.broadcast %9 : vector<1x32xf32> to vector<2x32xf32>
    %11 = arith.addf %7, %10 : vector<2x32xf32>
    %cst_11 = arith.constant 0.000000e+00 : f32
    %12 = vector.broadcast %cst_11 : f32 to vector<2x32xf32>
    %13 = arith.cmpf ogt, %11, %12 : vector<2x32xf32>
    %c0_12 = arith.constant 0 : index
    %c0_13 = arith.constant 0 : index
    %c0_14 = arith.constant 0 : index
    %14 = vector.load %arg4[%c0_12, %c0_13, %c0_14] : memref<3x1x32xf32, #tpu.memory_space<vmem>>, vector<1x1x32xf32>
    %15 = vector.shape_cast %14 : vector<1x1x32xf32> to vector<1x32xf32>
    %16 = vector.broadcast %15 : vector<1x32xf32> to vector<2x32xf32>
    %17 = arith.mulf %16, %11 : vector<2x32xf32>
    %18 = arith.select %13, %11, %17 : vector<2x32xi1>, vector<2x32xf32>
    %19 = arith.truncf %18 : vector<2x32xf32> to vector<2x32xbf16>
    %c1 = arith.constant 1 : index
    %c0_15 = arith.constant 0 : index
    %c0_16 = arith.constant 0 : index
    %20 = vector.load %arg2[%c1, %c0_15, %c0_16] : memref<3x32x32xbf16, #tpu.memory_space<vmem>>, vector<1x32x32xbf16>
    %21 = vector.shape_cast %20 : vector<1x32x32xbf16> to vector<32x32xbf16>
    %cst_17 = arith.constant dense<0.000000e+00> : vector<2x32xf32>
    %22 = tpu.matmul %19, %21, %cst_17 {dimension_numbers = #tpu.dot_dimension_numbers<[1], [0], [0], [1], [0, 0, 1, 1], [], []>} : vector<2x32xbf16>, vector<32x32xbf16>, vector<2x32xf32> -> vector<2x32xf32>
    %c1_18 = arith.constant 1 : index
    %c0_19 = arith.constant 0 : index
    %c0_20 = arith.constant 0 : index
    %23 = vector.load %arg3[%c1_18, %c0_19, %c0_20] : memref<3x1x32xf32, #tpu.memory_space<vmem>>, vector<1x1x32xf32>
    %24 = vector.shape_cast %23 : vector<1x1x32xf32> to vector<1x32xf32>
    %25 = vector.broadcast %24 : vector<1x32xf32> to vector<2x32xf32>
    %26 = arith.addf %22, %25 : vector<2x32xf32>
    %cst_21 = arith.constant 0.000000e+00 : f32
    %27 = vector.broadcast %cst_21 : f32 to vector<2x32xf32>
    %28 = arith.cmpf ogt, %26, %27 : vector<2x32xf32>
    %c1_22 = arith.constant 1 : index
    %c0_23 = arith.constant 0 : index
    %c0_24 = arith.constant 0 : index
    %29 = vector.load %arg4[%c1_22, %c0_23, %c0_24] : memref<3x1x32xf32, #tpu.memory_space<vmem>>, vector<1x1x32xf32>
    %30 = vector.shape_cast %29 : vector<1x1x32xf32> to vector<1x32xf32>
    %31 = vector.broadcast %30 : vector<1x32xf32> to vector<2x32xf32>
    %32 = arith.mulf %31, %26 : vector<2x32xf32>
    %33 = arith.select %28, %26, %32 : vector<2x32xi1>, vector<2x32xf32>
    %34 = arith.truncf %33 : vector<2x32xf32> to vector<2x32xbf16>
    %c2 = arith.constant 2 : index
    %c0_25 = arith.constant 0 : index
    %c0_26 = arith.constant 0 : index
    %35 = vector.load %arg2[%c2, %c0_25, %c0_26] : memref<3x32x32xbf16, #tpu.memory_space<vmem>>, vector<1x32x32xbf16>
    %36 = vector.shape_cast %35 : vector<1x32x32xbf16> to vector<32x32xbf16>
    %cst_27 = arith.constant dense<0.000000e+00> : vector<2x32xf32>
    %37 = tpu.matmul %34, %36, %cst_27 {dimension_numbers = #tpu.dot_dimension_numbers<[1], [0], [0], [1], [0, 0, 1, 1], [], []>} : vector<2x32xbf16>, vector<32x32xbf16>, vector<2x32xf32> -> vector<2x32xf32>
    %c2_28 = arith.constant 2 : index
    %c0_29 = arith.constant 0 : index
    %c0_30 = arith.constant 0 : index
    %38 = vector.load %arg3[%c2_28, %c0_29, %c0_30] : memref<3x1x32xf32, #tpu.memory_space<vmem>>, vector<1x1x32xf32>
    %39 = vector.shape_cast %38 : vector<1x1x32xf32> to vector<1x32xf32>
    %40 = vector.broadcast %39 : vector<1x32xf32> to vector<2x32xf32>
    %41 = arith.addf %37, %40 : vector<2x32xf32>
    %cst_31 = arith.constant 0.000000e+00 : f32
    %42 = vector.broadcast %cst_31 : f32 to vector<2x32xf32>
    %43 = arith.cmpf ogt, %41, %42 : vector<2x32xf32>
    %c2_32 = arith.constant 2 : index
    %c0_33 = arith.constant 0 : index
    %c0_34 = arith.constant 0 : index
    %44 = vector.load %arg4[%c2_32, %c0_33, %c0_34] : memref<3x1x32xf32, #tpu.memory_space<vmem>>, vector<1x1x32xf32>
    %45 = vector.shape_cast %44 : vector<1x1x32xf32> to vector<1x32xf32>
    %46 = vector.broadcast %45 : vector<1x32xf32> to vector<2x32xf32>
    %47 = arith.mulf %46, %41 : vector<2x32xf32>
    %48 = arith.select %43, %41, %47 : vector<2x32xi1>, vector<2x32xf32>
    %49 = arith.truncf %48 : vector<2x32xf32> to vector<2x32xbf16>
    %c0_35 = arith.constant 0 : index
    %c0_36 = arith.constant 0 : index
    %50 = vector.load %arg5[%c0_35, %c0_36] : memref<32x1xbf16, #tpu.memory_space<vmem>>, vector<32x1xbf16>
    %cst_37 = arith.constant dense<0.000000e+00> : vector<2x1xf32>
    %51 = tpu.matmul %49, %50, %cst_37 {dimension_numbers = #tpu.dot_dimension_numbers<[1], [0], [0], [1], [0, 0, 1, 1], [], []>} : vector<2x32xbf16>, vector<32x1xbf16>, vector<2x1xf32> -> vector<2x1xf32>
    %c0_38 = arith.constant 0 : index
    %c0_39 = arith.constant 0 : index
    %52 = vector.load %arg6[%c0_38, %c0_39] : memref<1x1xf32, #tpu.memory_space<vmem>>, vector<1x1xf32>
    %53 = vector.broadcast %52 : vector<1x1xf32> to vector<2x1xf32>
    %54 = arith.addf %51, %53 : vector<2x1xf32>
    %c0_40 = arith.constant 0 : index
    %c0_41 = arith.constant 0 : index
    %55 = vector.load %arg7[%c0_40, %c0_41] : memref<2x1xf32, #tpu.memory_space<vmem>>, vector<2x1xf32>
    tpu.vector_store %arg7[%c0_40, %c0_41], %54 {strides = array<i32>} : memref<2x1xf32, #tpu.memory_space<vmem>>, vector<2x1xf32>,
    return
  }
}

</mosaic_0001>

<bundles_post_ra>
// kernel: graph_network_forward.6
= control target key start
LH: loop header
LB: loop body
LE: loop exit
PB: predicated region body
PF: predicated region fallthrough
CT: control target
= control target key end

     0   :  { %17 = vsyncpa [#allocation6], 0  ;;  %s705_s0 = inlined_call_operand.vmem [shape: s32[16], index: 0, kind: input, shape index: {}]   ;;  %s706_s1 = inlined_call_operand.vmem [shape: s32[16], index: 1, kind: input, shape index: {}]   ;;  %s707_s2 = inlined_call_operand.vmem [shape: f32[8,32], index: 2, kind: input, shape index: {}]   ;;  %s708_s3 = inlined_call_operand.vmem [shape: f32[16,32], index: 3, kind: input, shape index: {}]   ;;  %s709_s4 = inlined_call_operand.vmem [shape: bf16[32,32], index: 4, kind: input, shape index: {}]   ;;  %s710_s5 = inlined_call_operand.vmem [shape: bf16[32,32], index: 5, kind: input, shape index: {}]   ;;  %s711_s6 = inlined_call_operand.vmem [shape: f32[1,32], index: 6, kind: input, shape index: {}]   ;;  %s712_s7 = inlined_call_operand.vmem [shape: bf16[32,32], index: 7, kind: input, shape index: {}]   ;;  %s713_s8 = inlined_call_operand.vmem [shape: bf16[32,32], index: 8, kind: input, shape index: {}]   ;;  %s714_s9 = inlined_call_operand.vmem [shape: f32[1,32], index: 9, kind: input, shape index: {}]   ;;  %s715_s10 = inlined_call_operand.vmem [shape: f32[8,32], index: 10, kind: output, shape index: {0}]   ;;  %s716_s11 = inlined_call_operand.hbm [shape: f32[16,32], index: 11, kind: output, shape index: {1}]  }
   0x1   :  { %18 = vsyncpa [#allocation8], 0 }
   0x2   :  { %19 = vsyncpa [#allocation5], 0  ;;  %s26_s19 = sshll.u32 %s705_s0, 4  ;;  %s36_s22 = sshll.u32 %s706_s1, 4  ;;  %s27_s19 = int_to_ptr.vmem [resolvable:$true] %s26_s19  ;;  %s37_s22 = int_to_ptr.vmem [resolvable:$true] %s36_s22 }
   0x3   :  { %s491_s23 = scalar_lea.vmem %s27_s19, 16  ;;  %p496_p1 = scmp.lt.s32.totalorder %s27_s19, %s27_s19 }
   0x4   :  { %p492_p0 = scmp.ne.s32.totalorder %s27_s19, %s491_s23  ;;  %p497_p2 = scmp.lt.s32.totalorder %s491_s23, %s491_s23 }
   0x6   :  { %p498_p3 = por %p497_p2, %p496_p1 }
   0x8   :  { %p499_p4 = pnand %p498_p3, %p492_p0 }
   0xa   :  { %502 = shalt.err (!%p499_p4)
}
   0xb   :  { %s557_s24 = smov [#allocation4]   ;;  %s503_s25 = scalar_lea.vmem %s37_s22, 16 }
   0xc   :  { %29 = dma.vmem_to_smem %s27_s19, 16, %s557_s24, [#allocation6]  }
   0xd   :  { %p504_p5 = scmp.ne.s32.totalorder %s37_s22, %s503_s25  ;;  %p508_p6 = scmp.lt.s32.totalorder %s37_s22, %s37_s22 }
   0xe   :  { %p509_p7 = scmp.lt.s32.totalorder %s503_s25, %s503_s25 }
  0x10   :  { %p510_p8 = por %p509_p7, %p508_p6 }
  0x12   :  { %p511_p9 = pnand %p510_p8, %p504_p5 }
  0x14   :  { %514 = shalt.err (!%p511_p9)
}
  0x15   :  { %s558_s0 = smov [#allocation7]  }
  0x16   :  { %39 = dma.vmem_to_smem %s37_s22, 16, %s558_s0, [#allocation8]  }
  0x17   :  { %543 = dma.done.wait [#allocation6], 16  }
  0x18   :  { %544 = vsyncadd [#allocation6], 4294967280 }
  0x19   :  { %545 = dma.done.wait [#allocation8], 16  }
  0x1a   :  { %546 = vsyncadd [#allocation8], 4294967280 }
  0x1b   :  { %62 = sfence }
  0x1c   :  { %s549_s1 = smov 0  }
  0x1d LB: > { %s70_s26 = sld [smem:[#allocation4 + %s551_s1]]  ;;  %vm74_vm0 = vcmask 253952   ;;  %s73_s30 = scalar_lea.vmem [#allocation2], %s551_s1  ;;  %s551_s1 = sphi %s549_s1, %s69_s1  }
  0x1e   : > { %s69_s1 = sadd.s32 1, %s551_s1  }
  0x1f   : > { %p66_p10 = scmp.ge.s32.totalorder %s69_s1, 16  }
  0x20   :  { %v483_v1 = vld [vmem:[%s710_s5 + $0x8] sm:$0xff] (%p66_p10)   ;;  %v559_v2 = vmov (%p66_p10), 0.0   ;;  %v485_v4 = vld [vmem:[%s710_s5] sm:$0xff] (%p66_p10)   ;;  %vm560_vm1 = vmmov (%p66_p10), 0   ;;  %vm102_vm2 = vcmask (%p66_p10), 261120  }
  0x21   :  { %68 = sbr.rel (!%p66_p10) target bundleno = 29 (0x1d), region = 94  ;;  %428 = vmatprep.subr.bf16.mxu0 (%p66_p10), %v559_v2  ;;  %436 = vmatprep.subr.bf16.mxu1 (%p66_p10), %v559_v2  ;;  %v484_v3 = vld [vmem:[%s709_s4 + $0x8] sm:$0xff] (%p66_p10)   ;;  %v486_v5 = vld [vmem:[%s709_s4] sm:$0xff] (%p66_p10)   ;;  %218 = vst.msk [vmem:[#allocation3] sm:$0xff] (%p66_p10), %vm102_vm2, %v559_v2 }
  0x22   :  { %429 = vmatpush3.bf16.msra.mxu0 (%p66_p10), %v483_v1  ;;  %432 = vmatprep.mubr.msk.bf16.mxu0 (%p66_p10), %vm560_vm1, %v559_v2  ;;  %v83_v6 = vld [vmem:[%s708_s3] sm:$0xff] (%p66_p10)  ;;  %v84_v7 = vld [vmem:[%s708_s3 + $0x8] sm:$0xff] (%p66_p10)  ;;  %s553_s3 = smov (%p66_p10), 0  }
  0x23   : > { %s71_s29 = scalar_lea.vmem %s707_s2, %s70_s26  ;;  %437 = vmatpush3.bf16.msra.mxu1 (%p66_p10), %v484_v3  ;;  %430 = vmatprep.subr.bf16.mxu0 (%p66_p10), %v559_v2  ;;  %v85_v9 = vpack.c.bf16 (%p66_p10), %v84_v7, %v83_v6  ;;  %v408_v14 = vld [vmem:[%s711_s6] ss:$0 sm:$0xff] (%p66_p10) }
  0x24   : > { %v72_v0 = vld [vmem:[%s71_s29] sm:$0x1]  ;;  %438 = vmatprep.subr.bf16.mxu1 (%p66_p10), %v559_v2  ;;  %440 = vmatprep.mubr.msk.bf16.mxu1 (%p66_p10), %vm560_vm1, %v559_v2 }
  0x25   : > { %75 = vst.msk [vmem:[%s73_s30] sm:$0x1] %vm74_vm0, %v72_v0 }
  0x26   :  { %431 = vmatpush3.bf16.msra.mxu0 %v485_v4 }
  0x27   :  { %439 = vmatpush3.bf16.msra.mxu1 %v486_v5 }
  0x29   :  { %433 = vmatmul.mubr.msk.bf16.vlgmr.msra.gmra.mxu0 %vm102_vm2, %v85_v9 }
  0x2c   :  { %v76_v8 = vld [vmem:[#allocation2] sm:$0xff]  ;;  %v77_v10 = vld [vmem:[#allocation2 + $0x8] sm:$0xff] }
  0x2d   :  { %v78_v11 = vpack.c.bf16 %v77_v10, %v76_v8 }
  0x2f   :  { %441 = vmatmul.mubr.msk.bf16.vlgmr.msra.gmra.mxu1 %vm102_vm2, %v78_v11 }
  0xe9   :  { %v140_v12 = vpop.f32.mrf.mxu0 }
  0xeb   :  { %v434_v16 = vpop.f32.mrf.mxu0 }
  0xed   :  { %v143_v19 = vpop.f32.mrf.mxu0 }
  0xef   :  { %v196_v13 = vpop.f32.mrf.mxu1  ;;  %v435_v23 = vpop.f32.mrf.mxu0 }
  0xf0   :  { %v197_v15 = vadd.f32 %v196_v13, %v140_v12 }
  0xf1   :  { %v442_v17 = vpop.f32.mrf.mxu1 }
  0xf2   :  { %vm203_vm3 = vcmp.gt.f32.partialorder %v197_v15, 0.0  ;;  %v212_v18 = vmul.f32 %v408_v14, %v197_v15 }
  0xf3   :  { %v199_v20 = vpop.f32.mrf.mxu1 }
  0xf4   :  { %v214_v21 = vsel %vm203_vm3, %v197_v15, %v212_v18  ;;  %v200_v22 = vadd.f32 %v199_v20, %v143_v19 }
  0xf5   :  { %216 = vst.msk [vmem:[#allocation9] sm:$0xff] %vm102_vm2, %v214_v21  ;;  %v443_v24 = vpop.f32.mrf.mxu1 }
  0xf6   :  { %vm204_vm4 = vcmp.gt.f32.partialorder %v200_v22, 0.0  ;;  %v213_v25 = vmul.f32 %v408_v14, %v200_v22 }
  0xf8   :  { %v215_v26 = vsel %vm204_vm4, %v200_v22, %v213_v25 }
  0xf9   :  { %217 = vst.msk [vmem:[#allocation9 + $0x8] sm:$0xff] %vm102_vm2, %v215_v26 }
  0xfa LB: > { %s225_s6 = sld [smem:[#allocation7 + %s555_s3]]  ;;  %s228_s24 = scalar_lea.vmem [#allocation9], %s555_s3  ;;  %s555_s3 = sphi %s553_s3, %s224_s3  }
  0xfb   : > { %s224_s3 = sadd.s32 1, %s555_s3  }
  0xfc   : > { %p221_p11 = scmp.ge.s32.totalorder %s224_s3, 16  }
  0xfd   :  { %444 = vmatprep.subr.bf16.mxu0 (%p221_p11), %v559_v2  ;;  %452 = vmatprep.subr.bf16.mxu1 (%p221_p11), %v559_v2  ;;  %v487_v30 = vld [vmem:[%s713_s8 + $0x8] sm:$0xff] (%p221_p11)   ;;  %v489_v32 = vld [vmem:[%s713_s8] sm:$0xff] (%p221_p11)   ;;  %s561_s8 = smov (%p221_p11), [#allocation9]  }
  0xfe   :  { %v488_v31 = vld [vmem:[%s712_s7 + $0x8] sm:$0xff] (%p221_p11)   ;;  %448 = vmatprep.mubr.msk.bf16.mxu0 (%p221_p11), %vm560_vm1, %v559_v2  ;;  %456 = vmatprep.mubr.msk.bf16.mxu1 (%p221_p11), %vm560_vm1, %v559_v2  ;;  %v490_v33 = vld [vmem:[%s712_s7] sm:$0xff] (%p221_p11)   ;;  %s373_s15 = sshll.u32 (%p221_p11), %s561_s8, 4  ;;  %s374_s15 = int_to_ptr.vmem [resolvable:$true] %s373_s15 }
  0xff   :  { %445 = vmatpush3.bf16.msra.mxu0 (%p221_p11), %v487_v30  ;;  %453 = vmatpush3.bf16.msra.mxu1 (%p221_p11), %v488_v31  ;;  %v239_v34 = vld [vmem:[%s707_s2] sm:$0xff] (%p221_p11)  ;;  %s515_s16 = scalar_lea.vmem (%p221_p11), %s374_s15, 256  ;;  %p520_p13 = scmp.lt.s32.totalorder (%p221_p11), %s374_s15, %s374_s15 }
 0x100   : > { %v229_v27 = vld [vmem:[%s228_s24] sm:$0x1]  ;;  %s226_s25 = scalar_lea.vmem [#allocation3], %s225_s6  ;;  %223 = sbr.rel (!%p221_p11) target bundleno = 250 (0xfa), region = 105  ;;  %446 = vmatprep.subr.bf16.mxu0 (%p221_p11), %v559_v2  ;;  %454 = vmatprep.subr.bf16.mxu1 (%p221_p11), %v559_v2  ;;  %v240_v36 = vpack.c.bf16 (%p221_p11), %v239_v34, %v239_v34 }
 0x101   : > { %v227_v28 = vld [vmem:[%s226_s25] sm:$0x1]  ;;  %p516_p12 = scmp.ne.s32.totalorder (%p221_p11), %s374_s15, %s515_s16  ;;  %p521_p0 = scmp.lt.s32.totalorder (%p221_p11), %s515_s16, %s515_s16 }
 0x102   : > { %v230_v29 = vadd.f32 %v229_v27, %v227_v28 }
 0x103   :  { %447 = vmatpush3.bf16.msra.mxu0 (%p221_p11), %v489_v32  ;;  %455 = vmatpush3.bf16.msra.mxu1 (%p221_p11), %v490_v33  ;;  %p522_p1 = por (%p221_p11), %p521_p0, %p520_p13 }
 0x104   : > { %232 = vst.msk [vmem:[%s226_s25] sm:$0x1] %vm74_vm0, %v230_v29 }
 0x105   :  { %p523_p2 = pnand %p522_p1, %p516_p12 }
 0x106   :  { %449 = vmatmul.mubr.msk.bf16.vlgmr.msra.gmra.mxu0 %vm102_vm2, %v240_v36 }
 0x10b   :  { %v233_v35 = vld [vmem:[#allocation3] sm:$0xff] }
 0x10c   :  { %v234_v37 = vpack.c.bf16 %v233_v35, %v233_v35 }
 0x10e   :  { %457 = vmatmul.mubr.msk.bf16.vlgmr.msra.gmra.mxu1 %vm102_vm2, %v234_v37 }
 0x10f   :  { %526 = shalt.err (!%p523_p2)
}
 0x110   :  { %s562_s2 = smov 128   ;;  %s563_s7 = smov 8   ;;  %v415_v40 = vld [vmem:[%s714_s9] ss:$0 sm:$0xff] }
 0x111   :  { %379 = dma.vmem_to_hbm [thread:$0]  %s374_s15, 256, %s716_s11, [#allocation5], %s562_s2, %s562_s2, %s563_s7  }
 0x1c6   :  { %v294_v38 = vpop.f32.mrf.mxu0 }
 0x1c8   :  { %v450_v42 = vpop.f32.mrf.mxu0 }
 0x1ca   :  { %v297_v45 = vpop.f32.mrf.mxu0 }
 0x1cc   :  { %v451_v48 = vpop.f32.mrf.mxu0 }
 0x1ce   :  { %v349_v39 = vpop.f32.mrf.mxu1 }
 0x1cf   :  { %v350_v41 = vadd.f32 %v349_v39, %v294_v38 }
 0x1d0   :  { %v458_v43 = vpop.f32.mrf.mxu1 }
 0x1d1   :  { %vm355_vm5 = vcmp.gt.f32.partialorder %v350_v41, 0.0  ;;  %v363_v44 = vmul.f32 %v415_v40, %v350_v41 }
 0x1d2   :  { %v352_v46 = vpop.f32.mrf.mxu1 }
 0x1d3   :  { %v364_v47 = vsel %vm355_vm5, %v350_v41, %v363_v44 }
 0x1d4   :  { %365 = vst.msk [vmem:[%s715_s10] sm:$0xff] %vm102_vm2, %v364_v47  ;;  %v459_v49 = vpop.f32.mrf.mxu1 }
 0x1d5   :  { %547 = dma.done.wait [#allocation5], 256  }
 0x1d6   :  { %548 = vsyncadd [#allocation5], 4294967040 }
 0x1d7   :  { %385 = vsyncpa [#allocation5], 1 }
 0x1d8   :  { %386 = vsyncpa [#allocation6], 1 }
 0x1d9   :  { %387 = vsyncpa [#allocation8], 1 }

// kernel: graph_network_forward.4
= control target key start
LH: loop header
LB: loop body
LE: loop exit
PB: predicated region body
PF: predicated region fallthrough
CT: control target
= control target key end

     0   :  { %17 = vsyncpa [#allocation5], 0  ;;  %s697_s0 = inlined_call_operand.vmem [shape: s32[16], index: 0, kind: input, shape index: {}]   ;;  %s698_s1 = inlined_call_operand.vmem [shape: s32[16], index: 1, kind: input, shape index: {}]   ;;  %s699_s2 = inlined_call_operand.vmem [shape: f32[8,39], index: 2, kind: input, shape index: {}]   ;;  %s700_s3 = inlined_call_operand.vmem [shape: f32[16,10], index: 3, kind: input, shape index: {}]   ;;  %s701_s4 = inlined_call_operand.vmem [shape: bf16[39,32], index: 4, kind: input, shape index: {}]   ;;  %s702_s5 = inlined_call_operand.vmem [shape: bf16[10,32], index: 5, kind: input, shape index: {}]   ;;  %s703_s6 = inlined_call_operand.vmem [shape: f32[1,32], index: 6, kind: input, shape index: {}]   ;;  %s704_s7 = inlined_call_operand.vmem [shape: bf16[32,32], index: 7, kind: input, shape index: {}]   ;;  %s705_s8 = inlined_call_operand.vmem [shape: bf16[39,32], index: 8, kind: input, shape index: {}]   ;;  %s706_s9 = inlined_call_operand.vmem [shape: f32[1,32], index: 9, kind: input, shape index: {}]   ;;  %s707_s10 = inlined_call_operand.vmem [shape: f32[8,32], index: 10, kind: output, shape index: {0}]   ;;  %s708_s11 = inlined_call_operand.vmem [shape: f32[16,32], index: 11, kind: output, shape index: {1}]  }
   0x1   :  { %s25_s19 = sshll.u32 %s697_s0, 4  ;;  %s26_s19 = int_to_ptr.vmem [resolvable:$true] %s25_s19 }
   0x2   :  { %18 = vsyncpa [#allocation7], 0  ;;  %s35_s22 = sshll.u32 %s698_s1, 4  ;;  %s496_s23 = scalar_lea.vmem %s26_s19, 16  ;;  %s36_s22 = int_to_ptr.vmem [resolvable:$true] %s35_s22 }
   0x3   :  { %p497_p0 = scmp.ne.s32.totalorder %s26_s19, %s496_s23  ;;  %p501_p1 = scmp.lt.s32.totalorder %s26_s19, %s26_s19 }
   0x4   :  { %p502_p2 = scmp.lt.s32.totalorder %s496_s23, %s496_s23 }
   0x6   :  { %p503_p3 = por %p502_p2, %p501_p1 }
   0x8   :  { %p504_p4 = pnand %p503_p3, %p497_p0 }
   0xa   :  { %507 = shalt.err (!%p504_p4)
}
   0xb   :  { %s540_s24 = smov [#allocation4]   ;;  %s508_s25 = scalar_lea.vmem %s36_s22, 16 }
   0xc   :  { %28 = dma.vmem_to_smem %s26_s19, 16, %s540_s24, [#allocation5]  }
   0xd   :  { %p509_p5 = scmp.ne.s32.totalorder %s36_s22, %s508_s25  ;;  %p513_p6 = scmp.lt.s32.totalorder %s36_s22, %s36_s22 }
   0xe   :  { %p514_p7 = scmp.lt.s32.totalorder %s508_s25, %s508_s25 }
  0x10   :  { %p515_p8 = por %p514_p7, %p513_p6 }
  0x12   :  { %p516_p9 = pnand %p515_p8, %p509_p5 }
  0x14   :  { %519 = shalt.err (!%p516_p9)
}
  0x15   :  { %s541_s0 = smov [#allocation6]  }
  0x16   :  { %38 = dma.vmem_to_smem %s36_s22, 16, %s541_s0, [#allocation7]  }
  0x17   :  { %528 = dma.done.wait [#allocation5], 16  }
  0x18   :  { %529 = vsyncadd [#allocation5], 4294967280 }
  0x19   :  { %530 = dma.done.wait [#allocation7], 16  }
  0x1a   :  { %531 = vsyncadd [#allocation7], 4294967280 }
  0x1b   :  { %61 = sfence }
  0x1c   :  { %s532_s1 = smov 0  }
  0x1d LB: > { %s69_s26 = sld [smem:[#allocation4 + %s534_s1]]  ;;  %vm73_vm0 = vcmask 311296   ;;  %s72_s30 = scalar_lea.vmem [#allocation2], %s534_s1  ;;  %s534_s1 = sphi %s532_s1, %s68_s1  }
  0x1e   : > { %s68_s1 = sadd.s32 1, %s534_s1  }
  0x1f   : > { %p65_p10 = scmp.ge.s32.totalorder %s68_s1, 16  }
  0x20   :  { %v487_v1 = vld [vmem:[%s701_s4 + $0x10] ss:$0 sps:$4 sm:$0xff] (%p65_p10)   ;;  %vm161_vm1 = vcmask (%p65_p10), 1042432   ;;  %v542_v2 = vmov (%p65_p10), 0.0   ;;  %vm162_vm2 = vcmask (%p65_p10), 1043456   ;;  %v543_v3 = vmov (%p65_p10), 65535  }
  0x21   :  { %67 = sbr.rel (!%p65_p10) target bundleno = 29 (0x1d), region = 94  ;;  %438 = vmatprep.subr.bf16.mxu1 (%p65_p10), %v542_v2  ;;  %432 = vmatprep.subr.bf16.mxu0 (%p65_p10), %v542_v2  ;;  %v163_v4 = vsel (%p65_p10), %vm161_vm1, 4294967295, %v543_v3  ;;  %v488_v5 = vld [vmem:[%s702_s5] sm:$0x1f] (%p65_p10)   ;;  %vm97_vm3 = vcmask (%p65_p10), 1044480   ;;  %vm544_vm4 = vmmov (%p65_p10), 0  }
  0x22   :  { %v622_v6 = vsel (%p65_p10), %vm162_vm2, %v163_v4, 0  ;;  %434 = vmatprep.mubr.msk.bf16.mxu0 (%p65_p10), %vm544_vm4, %v542_v2  ;;  %v83_v7 = vld [vmem:[%s700_s3] sm:$0xff] (%p65_p10)  ;;  %444 = vmatprep.mubr.msk.bf16.mxu1 (%p65_p10), %vm544_vm4, %v542_v2  ;;  %v99_v9 = vsel (%p65_p10), %vm97_vm3, %v488_v5, 0  ;;  %v84_v10 = vld [vmem:[%s700_s3 + $0x8] sm:$0xff] (%p65_p10)  ;;  %vm93_vm5 = vcmask (%p65_p10), 80896   ;;  %vm157_vm6 = vcmask (%p65_p10), 318464  }
  0x23   : > { %s70_s29 = scalar_lea.vmem %s699_s2, %s69_s26  ;;  %v166_v8 = vand.u32 (%p65_p10), %v487_v1, %v622_v6  ;;  %433 = vmatpush3.bf16.msra.mxu0 (%p65_p10), %v99_v9  ;;  %v85_v11 = vpack.c.bf16 (%p65_p10), %v84_v10, %v83_v7  ;;  %v489_v12 = vld [vmem:[%s701_s4 + $0x8] sm:$0xff] (%p65_p10)   ;;  %v490_v13 = vld [vmem:[%s701_s4] sm:$0xff] (%p65_p10)   ;;  %vm222_vm7 = vcmask (%p65_p10), 261120  }
  0x24   : > { %v71_v0 = vld [vmem:[%s70_s29] sm:$0x1]  ;;  %225 = vst.msk [vmem:[#allocation3] sm:$0xff] (%p65_p10), %vm222_vm7, %v542_v2 }
  0x25   : > { %74 = vst.msk [vmem:[%s72_s30] sm:$0x1] %vm73_vm0, %v71_v0  ;;  %439 = vmatpush3.bf16.msra.mxu1 (%p65_p10), %v166_v8  ;;  %v410_v22 = vld [vmem:[%s703_s6] ss:$0 sm:$0xff] (%p65_p10)  ;;  %s536_s6 = smov (%p65_p10), 0  }
  0x26   :  { %440 = vmatprep.subr.bf16.mxu1 %v542_v2  ;;  %435 = vmatmul.mubr.msk.bf16.vlgmr.msra.gmra.mxu0 %vm93_vm5, %v85_v11 }
  0x29   :  { %441 = vmatpush3.bf16.msra.mxu1 %v489_v12 }
  0x2a   :  { %442 = vmatprep.subr.bf16.mxu1 %v542_v2 }
  0x2c   :  { %v75_v14 = vld [vmem:[#allocation2] sm:$0xff]  ;;  %v76_v15 = vld [vmem:[#allocation2 + $0x8] sm:$0xff] }
  0x2d   :  { %v77_v16 = vpack.c.bf16 %v76_v15, %v75_v14  ;;  %443 = vmatpush3.bf16.msra.mxu1 %v490_v13 }
  0x30   :  { %445 = vmatmul.mubr.msk.bf16.vlgmr.msra.gmra.mxu1 %vm157_vm6, %v77_v16 }
  0xe6   :  { %v135_v17 = vpop.f32.mrf.mxu0 }
  0xe8   :  { %v436_v18 = vpop.f32.mrf.mxu0 }
  0xea   :  { %v138_v19 = vpop.f32.mrf.mxu0 }
  0xec   :  { %v437_v20 = vpop.f32.mrf.mxu0 }
  0xf0   :  { %v202_v21 = vpop.f32.mrf.mxu1 }
  0xf1   :  { %v203_v23 = vadd.f32 %v202_v21, %v135_v17 }
  0xf2   :  { %v446_v24 = vpop.f32.mrf.mxu1 }
  0xf3   :  { %vm209_vm8 = vcmp.gt.f32.partialorder %v203_v23, 0.0  ;;  %v218_v25 = vmul.f32 %v410_v22, %v203_v23 }
  0xf4   :  { %v205_v26 = vpop.f32.mrf.mxu1 }
  0xf5   :  { %v220_v27 = vsel %vm209_vm8, %v203_v23, %v218_v25  ;;  %v206_v28 = vadd.f32 %v205_v26, %v138_v19 }
  0xf6   :  { %223 = vst.msk [vmem:[%s708_s11] sm:$0xff] %vm222_vm7, %v220_v27  ;;  %v447_v29 = vpop.f32.mrf.mxu1 }
  0xf7   :  { %vm210_vm9 = vcmp.gt.f32.partialorder %v206_v28, 0.0  ;;  %v219_v30 = vmul.f32 %v410_v22, %v206_v28 }
  0xf9   :  { %v221_v31 = vsel %vm210_vm9, %v206_v28, %v219_v30 }
  0xfa   :  { %224 = vst.msk [vmem:[%s708_s11 + $0x8] sm:$0xff] %vm222_vm7, %v221_v31 }
  0xfb LB: > { %s232_s1 = sld [smem:[#allocation6 + %s538_s6]]  ;;  %s235_s28 = scalar_lea.vmem %s708_s11, %s538_s6  ;;  %vm238_vm10 = vcmask 253952   ;;  %s538_s6 = sphi %s536_s6, %s231_s6  }
  0xfc   : > { %s231_s6 = sadd.s32 1, %s538_s6  }
  0xfd   : > { %p228_p11 = scmp.ge.s32.totalorder %s231_s6, 16  }
  0xfe   :  { %458 = vmatprep.subr.bf16.mxu1 (%p228_p11), %v542_v2  ;;  %v491_v35 = vld [vmem:[%s704_s7 + $0x8] sm:$0xff] (%p228_p11)   ;;  %448 = vmatprep.subr.bf16.mxu0 (%p228_p11), %v542_v2  ;;  %v492_v36 = vld [vmem:[%s705_s8 + $0x10] ss:$0 sps:$4 sm:$0xff] (%p228_p11)   ;;  %v493_v37 = vld [vmem:[%s704_s7] sm:$0xff] (%p228_p11)  }
  0xff   :  { %462 = vmatprep.mubr.msk.bf16.mxu1 (%p228_p11), %vm544_vm4, %v542_v2  ;;  %454 = vmatprep.mubr.msk.bf16.mxu0 (%p228_p11), %vm544_vm4, %v542_v2  ;;  %v272_v38 = vand.u32 (%p228_p11), %v492_v36, %v622_v6  ;;  %v494_v40 = vld [vmem:[%s705_s8 + $0x8] sm:$0xff] (%p228_p11)   ;;  %v495_v42 = vld [vmem:[%s705_s8] sm:$0xff] (%p228_p11)  }
 0x100   :  { %459 = vmatpush3.bf16.msra.mxu1 (%p228_p11), %v491_v35  ;;  %v246_v43 = vld [vmem:[%s699_s2] sm:$0xff] (%p228_p11) }
 0x101   : > { %v236_v32 = vld [vmem:[%s235_s28] sm:$0x1]  ;;  %s233_s29 = scalar_lea.vmem [#allocation3], %s232_s1  ;;  %230 = sbr.rel (!%p228_p11) target bundleno = 251 (0xfb), region = 105  ;;  %460 = vmatprep.subr.bf16.mxu1 (%p228_p11), %v542_v2  ;;  %449 = vmatpush3.bf16.msra.mxu0 (%p228_p11), %v272_v38  ;;  %v247_v44 = vpack.c.bf16 (%p228_p11), %v246_v43, %v246_v43 }
 0x102   : > { %v234_v33 = vld [vmem:[%s233_s29] sm:$0x1]  ;;  %450 = vmatprep.subr.bf16.mxu0 (%p228_p11), %v542_v2 }
 0x103   : > { %v237_v34 = vadd.f32 %v236_v32, %v234_v33  ;;  %v418_v50 = vld [vmem:[%s706_s9] ss:$0 sm:$0xff] (%p228_p11) }
 0x104   :  { %461 = vmatpush3.bf16.msra.mxu1 (%p228_p11), %v493_v37 }
 0x105   : > { %239 = vst.msk [vmem:[%s233_s29] sm:$0x1] %vm238_vm10, %v237_v34  ;;  %451 = vmatpush3.bf16.msra.mxu0 (%p228_p11), %v494_v40 }
 0x106   :  { %452 = vmatprep.subr.bf16.mxu0 %v542_v2 }
 0x109   :  { %453 = vmatpush3.bf16.msra.mxu0 %v495_v42 }
 0x10c   :  { %v240_v39 = vld [vmem:[#allocation3] sm:$0xff]  ;;  %455 = vmatmul.mubr.msk.bf16.vlgmr.msra.gmra.mxu0 %vm157_vm6, %v247_v44 }
 0x10d   :  { %v241_v41 = vpack.c.bf16 %v240_v39, %v240_v39 }
 0x10f   :  { %463 = vmatmul.mubr.msk.bf16.vlgmr.msra.gmra.mxu1 %vm222_vm7, %v241_v41 }
 0x1cc   :  { %v308_v49 = vpop.f32.mrf.mxu0 }
 0x1ce   :  { %v456_v52 = vpop.f32.mrf.mxu0 }
 0x1cf   :  { %v363_v45 = vpop.f32.mrf.mxu1 }
 0x1d0   :  { %v364_v51 = vadd.f32 %v363_v45, %v308_v49  ;;  %v311_v54 = vpop.f32.mrf.mxu0 }
 0x1d1   :  { %v464_v46 = vpop.f32.mrf.mxu1 }
 0x1d2   :  { %vm369_vm11 = vcmp.gt.f32.partialorder %v364_v51, 0.0  ;;  %v377_v53 = vmul.f32 %v418_v50, %v364_v51  ;;  %v457_v56 = vpop.f32.mrf.mxu0 }
 0x1d3   :  { %v366_v47 = vpop.f32.mrf.mxu1 }
 0x1d4   :  { %v378_v55 = vsel %vm369_vm11, %v364_v51, %v377_v53 }
 0x1d5   :  { %v465_v48 = vpop.f32.mrf.mxu1  ;;  %379 = vst.msk [vmem:[%s707_s10] sm:$0xff] %vm222_vm7, %v378_v55 }
 0x1d6   :  { %388 = vsyncpa [#allocation5], 1 }
 0x1d7   :  { %389 = vsyncpa [#allocation7], 1 }

// kernel: graph_network_forward.5
= control target key start
LH: loop header
LB: loop body
LE: loop exit
PB: predicated region body
PF: predicated region fallthrough
CT: control target
= control target key end

     0   :  { %17 = vsyncpa [#allocation5], 0  ;;  %s670_s0 = inlined_call_operand.vmem [shape: s32[16], index: 0, kind: input, shape index: {}]   ;;  %s671_s1 = inlined_call_operand.vmem [shape: s32[16], index: 1, kind: input, shape index: {}]   ;;  %s672_s2 = inlined_call_operand.vmem [shape: f32[8,32], index: 2, kind: input, shape index: {}]   ;;  %s673_s3 = inlined_call_operand.vmem [shape: f32[16,32], index: 3, kind: input, shape index: {}]   ;;  %s674_s4 = inlined_call_operand.vmem [shape: bf16[32,32], index: 4, kind: input, shape index: {}]   ;;  %s675_s5 = inlined_call_operand.vmem [shape: bf16[32,32], index: 5, kind: input, shape index: {}]   ;;  %s676_s6 = inlined_call_operand.vmem [shape: f32[1,32], index: 6, kind: input, shape index: {}]   ;;  %s677_s7 = inlined_call_operand.vmem [shape: bf16[32,32], index: 7, kind: input, shape index: {}]   ;;  %s678_s8 = inlined_call_operand.vmem [shape: bf16[32,32], index: 8, kind: input, shape index: {}]   ;;  %s679_s9 = inlined_call_operand.vmem [shape: f32[1,32], index: 9, kind: input, shape index: {}]   ;;  %s680_s10 = inlined_call_operand.vmem [shape: f32[8,32], index: 10, kind: output, shape index: {0}]   ;;  %s681_s11 = inlined_call_operand.vmem [shape: f32[16,32], index: 11, kind: output, shape index: {1}]  }
   0x1   :  { %s25_s19 = sshll.u32 %s670_s0, 4  ;;  %s26_s19 = int_to_ptr.vmem [resolvable:$true] %s25_s19 }
   0x2   :  { %18 = vsyncpa [#allocation7], 0  ;;  %s35_s22 = sshll.u32 %s671_s1, 4  ;;  %s475_s23 = scalar_lea.vmem %s26_s19, 16  ;;  %s36_s22 = int_to_ptr.vmem [resolvable:$true] %s35_s22 }
   0x3   :  { %p476_p0 = scmp.ne.s32.totalorder %s26_s19, %s475_s23  ;;  %p480_p1 = scmp.lt.s32.totalorder %s26_s19, %s26_s19 }
   0x4   :  { %p481_p2 = scmp.lt.s32.totalorder %s475_s23, %s475_s23 }
   0x6   :  { %p482_p3 = por %p481_p2, %p480_p1 }
   0x8   :  { %p483_p4 = pnand %p482_p3, %p476_p0 }
   0xa   :  { %486 = shalt.err (!%p483_p4)
}
   0xb   :  { %s519_s24 = smov [#allocation4]   ;;  %s487_s25 = scalar_lea.vmem %s36_s22, 16 }
   0xc   :  { %28 = dma.vmem_to_smem %s26_s19, 16, %s519_s24, [#allocation5]  }
   0xd   :  { %p488_p5 = scmp.ne.s32.totalorder %s36_s22, %s487_s25  ;;  %p492_p6 = scmp.lt.s32.totalorder %s36_s22, %s36_s22 }
   0xe   :  { %p493_p7 = scmp.lt.s32.totalorder %s487_s25, %s487_s25 }
  0x10   :  { %p494_p8 = por %p493_p7, %p492_p6 }
  0x12   :  { %p495_p9 = pnand %p494_p8, %p488_p5 }
  0x14   :  { %498 = shalt.err (!%p495_p9)
}
  0x15   :  { %s520_s0 = smov [#allocation6]  }
  0x16   :  { %38 = dma.vmem_to_smem %s36_s22, 16, %s520_s0, [#allocation7]  }
  0x17   :  { %507 = dma.done.wait [#allocation5], 16  }
  0x18   :  { %508 = vsyncadd [#allocation5], 4294967280 }
  0x19   :  { %509 = dma.done.wait [#allocation7], 16  }
  0x1a   :  { %510 = vsyncadd [#allocation7], 4294967280 }
  0x1b   :  { %61 = sfence }
  0x1c   :  { %s511_s1 = smov 0  }
  0x1d LB: > { %s69_s26 = sld [smem:[#allocation4 + %s513_s1]]  ;;  %vm73_vm0 = vcmask 253952   ;;  %s72_s30 = scalar_lea.vmem [#allocation2], %s513_s1  ;;  %s513_s1 = sphi %s511_s1, %s68_s1  }
  0x1e   : > { %s68_s1 = sadd.s32 1, %s513_s1  }
  0x1f   : > { %p65_p10 = scmp.ge.s32.totalorder %s68_s1, 16  }
  0x20   :  { %v467_v1 = vld [vmem:[%s675_s5 + $0x8] sm:$0xff] (%p65_p10)   ;;  %v521_v2 = vmov (%p65_p10), 0.0   ;;  %v469_v4 = vld [vmem:[%s675_s5] sm:$0xff] (%p65_p10)   ;;  %vm522_vm1 = vmmov (%p65_p10), 0   ;;  %vm101_vm2 = vcmask (%p65_p10), 261120   ;;  %s515_s0 = smov (%p65_p10), 0  }
  0x21   :  { %67 = sbr.rel (!%p65_p10) target bundleno = 29 (0x1d), region = 94  ;;  %415 = vmatprep.subr.bf16.mxu0 (%p65_p10), %v521_v2  ;;  %423 = vmatprep.subr.bf16.mxu1 (%p65_p10), %v521_v2  ;;  %v468_v3 = vld [vmem:[%s674_s4 + $0x8] sm:$0xff] (%p65_p10)   ;;  %v470_v5 = vld [vmem:[%s674_s4] sm:$0xff] (%p65_p10)   ;;  %217 = vst.msk [vmem:[#allocation3] sm:$0xff] (%p65_p10), %vm101_vm2, %v521_v2 }
  0x22   :  { %416 = vmatpush3.bf16.msra.mxu0 (%p65_p10), %v467_v1  ;;  %419 = vmatprep.mubr.msk.bf16.mxu0 (%p65_p10), %vm522_vm1, %v521_v2  ;;  %v82_v6 = vld [vmem:[%s673_s3] sm:$0xff] (%p65_p10)  ;;  %v83_v7 = vld [vmem:[%s673_s3 + $0x8] sm:$0xff] (%p65_p10) }
  0x23   : > { %s70_s29 = scalar_lea.vmem %s672_s2, %s69_s26  ;;  %424 = vmatpush3.bf16.msra.mxu1 (%p65_p10), %v468_v3  ;;  %417 = vmatprep.subr.bf16.mxu0 (%p65_p10), %v521_v2  ;;  %v84_v9 = vpack.c.bf16 (%p65_p10), %v83_v7, %v82_v6  ;;  %v395_v14 = vld [vmem:[%s676_s6] ss:$0 sm:$0xff] (%p65_p10) }
  0x24   : > { %v71_v0 = vld [vmem:[%s70_s29] sm:$0x1]  ;;  %425 = vmatprep.subr.bf16.mxu1 (%p65_p10), %v521_v2  ;;  %427 = vmatprep.mubr.msk.bf16.mxu1 (%p65_p10), %vm522_vm1, %v521_v2 }
  0x25   : > { %74 = vst.msk [vmem:[%s72_s30] sm:$0x1] %vm73_vm0, %v71_v0 }
  0x26   :  { %418 = vmatpush3.bf16.msra.mxu0 %v469_v4 }
  0x27   :  { %426 = vmatpush3.bf16.msra.mxu1 %v470_v5 }
  0x29   :  { %420 = vmatmul.mubr.msk.bf16.vlgmr.msra.gmra.mxu0 %vm101_vm2, %v84_v9 }
  0x2c   :  { %v75_v8 = vld [vmem:[#allocation2] sm:$0xff]  ;;  %v76_v10 = vld [vmem:[#allocation2 + $0x8] sm:$0xff] }
  0x2d   :  { %v77_v11 = vpack.c.bf16 %v76_v10, %v75_v8 }
  0x2f   :  { %428 = vmatmul.mubr.msk.bf16.vlgmr.msra.gmra.mxu1 %vm101_vm2, %v77_v11 }
  0xe9   :  { %v139_v12 = vpop.f32.mrf.mxu0 }
  0xeb   :  { %v421_v16 = vpop.f32.mrf.mxu0 }
  0xed   :  { %v142_v19 = vpop.f32.mrf.mxu0 }
  0xef   :  { %v195_v13 = vpop.f32.mrf.mxu1  ;;  %v422_v23 = vpop.f32.mrf.mxu0 }
  0xf0   :  { %v196_v15 = vadd.f32 %v195_v13, %v139_v12 }
  0xf1   :  { %v429_v17 = vpop.f32.mrf.mxu1 }
  0xf2   :  { %vm202_vm3 = vcmp.gt.f32.partialorder %v196_v15, 0.0  ;;  %v211_v18 = vmul.f32 %v395_v14, %v196_v15 }
  0xf3   :  { %v198_v20 = vpop.f32.mrf.mxu1 }
  0xf4   :  { %v213_v21 = vsel %vm202_vm3, %v196_v15, %v211_v18  ;;  %v199_v22 = vadd.f32 %v198_v20, %v142_v19 }
  0xf5   :  { %215 = vst.msk [vmem:[%s681_s11] sm:$0xff] %vm101_vm2, %v213_v21  ;;  %v430_v24 = vpop.f32.mrf.mxu1 }
  0xf6   :  { %vm203_vm4 = vcmp.gt.f32.partialorder %v199_v22, 0.0  ;;  %v212_v25 = vmul.f32 %v395_v14, %v199_v22 }
  0xf8   :  { %v214_v26 = vsel %vm203_vm4, %v199_v22, %v212_v25 }
  0xf9   :  { %216 = vst.msk [vmem:[%s681_s11 + $0x8] sm:$0xff] %vm101_vm2, %v214_v26 }
  0xfa LB: > { %s224_s1 = sld [smem:[#allocation6 + %s517_s0]]  ;;  %s227_s28 = scalar_lea.vmem %s681_s11, %s517_s0  ;;  %s517_s0 = sphi %s515_s0, %s223_s0  }
  0xfb   : > { %s223_s0 = sadd.s32 1, %s517_s0  }
  0xfc   : > { %p220_p11 = scmp.ge.s32.totalorder %s223_s0, 16  }
  0xfd   :  { %431 = vmatprep.subr.bf16.mxu0 (%p220_p11), %v521_v2  ;;  %439 = vmatprep.subr.bf16.mxu1 (%p220_p11), %v521_v2  ;;  %v471_v30 = vld [vmem:[%s678_s8 + $0x8] sm:$0xff] (%p220_p11)   ;;  %v473_v32 = vld [vmem:[%s678_s8] sm:$0xff] (%p220_p11)  }
  0xfe   :  { %v472_v31 = vld [vmem:[%s677_s7 + $0x8] sm:$0xff] (%p220_p11)   ;;  %435 = vmatprep.mubr.msk.bf16.mxu0 (%p220_p11), %vm522_vm1, %v521_v2  ;;  %443 = vmatprep.mubr.msk.bf16.mxu1 (%p220_p11), %vm522_vm1, %v521_v2  ;;  %v474_v33 = vld [vmem:[%s677_s7] sm:$0xff] (%p220_p11)  }
  0xff   :  { %432 = vmatpush3.bf16.msra.mxu0 (%p220_p11), %v471_v30  ;;  %440 = vmatpush3.bf16.msra.mxu1 (%p220_p11), %v472_v31  ;;  %v238_v34 = vld [vmem:[%s672_s2] sm:$0xff] (%p220_p11) }
 0x100   : > { %v228_v27 = vld [vmem:[%s227_s28] sm:$0x1]  ;;  %s225_s29 = scalar_lea.vmem [#allocation3], %s224_s1  ;;  %222 = sbr.rel (!%p220_p11) target bundleno = 250 (0xfa), region = 105  ;;  %433 = vmatprep.subr.bf16.mxu0 (%p220_p11), %v521_v2  ;;  %441 = vmatprep.subr.bf16.mxu1 (%p220_p11), %v521_v2  ;;  %v239_v36 = vpack.c.bf16 (%p220_p11), %v238_v34, %v238_v34 }
 0x101   : > { %v226_v28 = vld [vmem:[%s225_s29] sm:$0x1] }
 0x102   : > { %v229_v29 = vadd.f32 %v228_v27, %v226_v28  ;;  %v402_v40 = vld [vmem:[%s679_s9] ss:$0 sm:$0xff] (%p220_p11) }
 0x103   :  { %434 = vmatpush3.bf16.msra.mxu0 (%p220_p11), %v473_v32  ;;  %442 = vmatpush3.bf16.msra.mxu1 (%p220_p11), %v474_v33 }
 0x104   : > { %231 = vst.msk [vmem:[%s225_s29] sm:$0x1] %vm73_vm0, %v229_v29 }
 0x106   :  { %436 = vmatmul.mubr.msk.bf16.vlgmr.msra.gmra.mxu0 %vm101_vm2, %v239_v36 }
 0x10b   :  { %v232_v35 = vld [vmem:[#allocation3] sm:$0xff] }
 0x10c   :  { %v233_v37 = vpack.c.bf16 %v232_v35, %v232_v35 }
 0x10e   :  { %444 = vmatmul.mubr.msk.bf16.vlgmr.msra.gmra.mxu1 %vm101_vm2, %v233_v37 }
 0x1c6   :  { %v293_v38 = vpop.f32.mrf.mxu0 }
 0x1c8   :  { %v437_v42 = vpop.f32.mrf.mxu0 }
 0x1ca   :  { %v296_v45 = vpop.f32.mrf.mxu0 }
 0x1cc   :  { %v438_v48 = vpop.f32.mrf.mxu0 }
 0x1ce   :  { %v348_v39 = vpop.f32.mrf.mxu1 }
 0x1cf   :  { %v349_v41 = vadd.f32 %v348_v39, %v293_v38 }
 0x1d0   :  { %v445_v43 = vpop.f32.mrf.mxu1 }
 0x1d1   :  { %vm354_vm5 = vcmp.gt.f32.partialorder %v349_v41, 0.0  ;;  %v362_v44 = vmul.f32 %v402_v40, %v349_v41 }
 0x1d2   :  { %v351_v46 = vpop.f32.mrf.mxu1 }
 0x1d3   :  { %v363_v47 = vsel %vm354_vm5, %v349_v41, %v362_v44 }
 0x1d4   :  { %364 = vst.msk [vmem:[%s680_s10] sm:$0xff] %vm101_vm2, %v363_v47  ;;  %v446_v49 = vpop.f32.mrf.mxu1 }
 0x1d5   :  { %373 = vsyncpa [#allocation5], 1 }
 0x1d6   :  { %374 = vsyncpa [#allocation7], 1 }

// kernel: graph_network_forward.7
= control target key start
LH: loop header
LB: loop body
LE: loop exit
PB: predicated region body
PF: predicated region fallthrough
CT: control target
= control target key end

     0   :  { %s612_s0 = inlined_call_operand.vmem [shape: s32[8], index: 0, kind: input, shape index: {}]   ;;  %s613_s1 = inlined_call_operand.vmem [shape: f32[8,32], index: 1, kind: input, shape index: {}]   ;;  %s614_s2 = inlined_call_operand.vmem [shape: bf16[3,32,32], index: 2, kind: input, shape index: {}]   ;;  %s615_s3 = inlined_call_operand.vmem [shape: f32[3,1,32], index: 3, kind: input, shape index: {}]   ;;  %s616_s4 = inlined_call_operand.vmem [shape: f32[3,1,32], index: 4, kind: input, shape index: {}]   ;;  %s617_s5 = inlined_call_operand.vmem [shape: bf16[32,1], index: 5, kind: input, shape index: {}]   ;;  %s618_s6 = inlined_call_operand.<no memory space> [shape: f32[1,1], index: 6, kind: input, shape index: {}]   ;;  %s619_s7 = inlined_call_operand.vmem [shape: f32[2,1], index: 7, kind: output, shape index: {}]  }
   0x1   :  { %v12_v0 = vstv %s618_s6 }
   0x2   :  { %13 = vst [vmem:[#allocation3] sm:$0x1] %v12_v0 }
   0x3   :  { %14 = vsyncpa [#allocation5], 0  ;;  %s21_s28 = sshll.u32 %s612_s0, 4  ;;  %s22_s28 = int_to_ptr.vmem [resolvable:$true] %s21_s28 }
   0x4   :  { %s472_s29 = scalar_lea.vmem %s22_s28, 16  ;;  %p477_p1 = scmp.lt.s32.totalorder %s22_s28, %s22_s28 }
   0x5   :  { %p473_p0 = scmp.ne.s32.totalorder %s22_s28, %s472_s29  ;;  %p478_p2 = scmp.lt.s32.totalorder %s472_s29, %s472_s29 }
   0x7   :  { %p479_p3 = por %p478_p2, %p477_p1 }
   0x9   :  { %p480_p4 = pnand %p479_p3, %p473_p0 }
   0xb   :  { %483 = shalt.err (!%p480_p4)
}
   0xc   :  { %s494_s30 = smov [#allocation4]  }
   0xd   :  { %24 = dma.vmem_to_smem %s22_s28, 16, %s494_s30, [#allocation5]  }
   0xe   :  { %488 = dma.done.wait [#allocation5], 16  }
   0xf   :  { %489 = vsyncadd [#allocation5], 4294967280 }
  0x10   :  { %40 = sfence }
  0x11   :  { %vm42_vm0 = vcmask 254976   ;;  %v495_v1 = vmov 0.0   ;;  %s490_s6 = smov 0  }
  0x12   :  { %43 = vst.msk [vmem:[#allocation2] sm:$0x3] %vm42_vm0, %v495_v1 }
  0x13 LB: > { %s50_s0 = sld [smem:[#allocation4 + %s492_s6]]  ;;  %s53_s10 = scalar_lea.vmem %s613_s1, %s492_s6  ;;  %vm56_vm1 = vcmask 253952   ;;  %s492_s6 = sphi %s490_s6, %s49_s6  }
  0x14   : > { %v54_v2 = vld [vmem:[%s53_s10] sm:$0x1]  ;;  %s49_s6 = sadd.s32 1, %s492_s6  }
  0x15   : > { %p46_p5 = scmp.ge.s32.totalorder %s49_s6, 8  }
  0x16   :  { %421 = vmatprep.subr.bf16.mxu0 (%p46_p5), %v495_v1  ;;  %v464_v5 = vld [vmem:[%s614_s2 + $0x8] sm:$0xff] (%p46_p5)   ;;  %429 = vmatprep.subr.bf16.mxu1 (%p46_p5), %v495_v1  ;;  %vm496_vm2 = vmmov (%p46_p5), 0   ;;  %v465_v6 = vld [vmem:[%s614_s2] sm:$0xff] (%p46_p5)   ;;  %vm83_vm3 = vcmask (%p46_p5), 261120   ;;  %v466_v9 = vld [vmem:[%s614_s2 + $0x18] sm:$0xff] (%p46_p5)   ;;  %vm364_vm7 = vcmask (%p46_p5), 1024  }
  0x17   :  { %425 = vmatprep.mubr.msk.bf16.mxu0 (%p46_p5), %vm496_vm2, %v495_v1  ;;  %433 = vmatprep.mubr.msk.bf16.mxu1 (%p46_p5), %vm496_vm2, %v495_v1  ;;  %v467_v10 = vld [vmem:[%s614_s2 + $0x10] sm:$0xff] (%p46_p5)   ;;  %v378_v11 = vld [vmem:[%s615_s3] ss:$0 sm:$0xff] (%p46_p5)  ;;  %v468_v21 = vld [vmem:[%s614_s2 + $0x28] sm:$0xff] (%p46_p5)  }
  0x18   :  { %422 = vmatpush3.bf16.msra.mxu0 (%p46_p5), %v464_v5  ;;  %430 = vmatpush3.bf16.msra.mxu1 (%p46_p5), %v466_v9  ;;  %v382_v13 = vld [vmem:[%s616_s4] ss:$0 sm:$0xff] (%p46_p5)  ;;  %v388_v23 = vld [vmem:[%s615_s3 + $0x1] ss:$0 sm:$0xff] (%p46_p5)  ;;  %v470_v33 = vld [vmem:[%s617_s5 + $0x8] sm:$0xff] (%p46_p5)  }
  0x19   : > { %s51_s11 = scalar_lea.vmem [#allocation2], %s50_s0  ;;  %48 = sbr.rel (!%p46_p5) target bundleno = 19 (0x13), region = 67  ;;  %423 = vmatprep.subr.bf16.mxu0 (%p46_p5), %v495_v1  ;;  %431 = vmatprep.subr.bf16.mxu1 (%p46_p5), %v495_v1  ;;  %v469_v22 = vld [vmem:[%s614_s2 + $0x20] sm:$0xff] (%p46_p5)  }
  0x1a   : > { %v52_v3 = vld [vmem:[%s51_s11] sm:$0x1]  ;;  %v393_v25 = vld [vmem:[%s616_s4 + $0x1] ss:$0 sm:$0xff] (%p46_p5)  ;;  %v399_v35 = vld [vmem:[%s615_s3 + $0x2] ss:$0 sm:$0xff] (%p46_p5) }
  0x1b   : > { %v55_v4 = vadd.f32 %v54_v2, %v52_v3  ;;  %v471_v34 = vld [vmem:[%s617_s5] sm:$0xff] (%p46_p5)  }
  0x1c   :  { %424 = vmatpush3.bf16.msra.mxu0 (%p46_p5), %v465_v6  ;;  %432 = vmatpush3.bf16.msra.mxu1 (%p46_p5), %v467_v10  ;;  %v404_v37 = vld [vmem:[%s616_s4 + $0x2] ss:$0 sm:$0xff] (%p46_p5) }
  0x1d   : > { %57 = vst.msk [vmem:[%s51_s11] sm:$0x1] %vm56_vm1, %v55_v4  ;;  %437 = vmatprep.subr.bf16.mxu0 (%p46_p5), %v495_v1  ;;  %445 = vmatprep.subr.bf16.mxu1 (%p46_p5), %v495_v1  ;;  %v405_v45 = vld [vmem:[#allocation3] ss:$0 sm:$0xff] (%p46_p5) }
  0x24   :  { %v58_v7 = vld [vmem:[#allocation2] sm:$0x3] }
  0x25   :  { %v59_v8 = vpack.c.bf16 %v58_v7, %v58_v7 }
  0x27   :  { %426 = vmatmul.mubr.msk.bf16.vlgmr.msra.gmra.mxu0 %vm83_vm3, %v59_v8 }
  0x28   :  { %441 = vmatprep.mubr.msk.bf16.mxu0 %vm496_vm2, %v495_v1  ;;  %438 = vmatpush3.bf16.msra.mxu0 %v468_v21 }
  0x29   :  { %439 = vmatprep.subr.bf16.mxu0 %v495_v1 }
  0x2c   :  { %440 = vmatpush3.bf16.msra.mxu0 %v469_v22 }
  0xe7   :  { %v121_v12 = vpop.f32.mrf.mxu0 }
  0xe8   :  { %v122_v14 = vadd.f32 %v378_v11, %v121_v12 }
  0xe9   :  { %v427_v15 = vpop.f32.mrf.mxu0 }
  0xea   :  { %vm127_vm4 = vcmp.gt.f32.partialorder %v122_v14, 0.0  ;;  %v135_v16 = vmul.f32 %v382_v13, %v122_v14 }
  0xeb   :  { %v124_v17 = vpop.f32.mrf.mxu0 }
  0xec   :  { %v136_v18 = vsel %vm127_vm4, %v122_v14, %v135_v16 }
  0xed   :  { %v137_v19 = vpack.c.bf16 %v136_v18, %v136_v18  ;;  %v428_v20 = vpop.f32.mrf.mxu0 }
  0xef   :  { %434 = vmatmul.mubr.msk.bf16.vlgmr.msra.gmra.mxu1 %vm83_vm3, %v137_v19 }
  0xf0   :  { %449 = vmatprep.mubr.msk.bf16.mxu1 %vm496_vm2, %v495_v1  ;;  %446 = vmatpush3.bf16.msra.mxu1 %v470_v33 }
  0xf1   :  { %447 = vmatprep.subr.bf16.mxu1 %v495_v1 }
  0xf4   :  { %448 = vmatpush3.bf16.msra.mxu1 %v471_v34 }
 0x1af   :  { %v200_v24 = vpop.f32.mrf.mxu1 }
 0x1b0   :  { %v201_v26 = vadd.f32 %v388_v23, %v200_v24 }
 0x1b1   :  { %v435_v27 = vpop.f32.mrf.mxu1 }
 0x1b2   :  { %vm206_vm5 = vcmp.gt.f32.partialorder %v201_v26, 0.0  ;;  %v215_v28 = vmul.f32 %v393_v25, %v201_v26 }
 0x1b3   :  { %v203_v29 = vpop.f32.mrf.mxu1 }
 0x1b4   :  { %v216_v30 = vsel %vm206_vm5, %v201_v26, %v215_v28 }
 0x1b5   :  { %v217_v31 = vpack.c.bf16 %v216_v30, %v216_v30  ;;  %v436_v32 = vpop.f32.mrf.mxu1 }
 0x1b7   :  { %442 = vmatmul.mubr.msk.bf16.vlgmr.msra.gmra.mxu0 %vm83_vm3, %v217_v31 }
 0x277   :  { %v280_v36 = vpop.f32.mrf.mxu0 }
 0x278   :  { %v281_v38 = vadd.f32 %v399_v35, %v280_v36 }
 0x279   :  { %v443_v39 = vpop.f32.mrf.mxu0 }
 0x27a   :  { %vm286_vm6 = vcmp.gt.f32.partialorder %v281_v38, 0.0  ;;  %v295_v40 = vmul.f32 %v404_v37, %v281_v38 }
 0x27b   :  { %v283_v41 = vpop.f32.mrf.mxu0 }
 0x27c   :  { %v296_v42 = vsel %vm286_vm6, %v281_v38, %v295_v40 }
 0x27d   :  { %v297_v43 = vpack.c.bf16 %v296_v42, %v296_v42  ;;  %v444_v44 = vpop.f32.mrf.mxu0 }
 0x27f   :  { %450 = vmatmul.mubr.msk.bf16.vlgmr.msra.gmra.mxu1 %vm83_vm3, %v297_v43 }
 0x33f   :  { %v358_v46 = vpop.f32.mrf.mxu1 }
 0x340   :  { %v359_v47 = vadd.f32 %v405_v45, %v358_v46 }
 0x341   :  { %v451_v48 = vpop.f32.mrf.mxu1 }
 0x342   :  { %365 = vst.msk [vmem:[%s619_s7] sm:$0x3] %vm364_vm7, %v359_v47 }
 0x343   :  { %v361_v49 = vpop.f32.mrf.mxu1 }
 0x345   :  { %v452_v50 = vpop.f32.mrf.mxu1 }
 0x346   :  { %370 = vsyncpa [#allocation5], 1 }

</bundles_post_ra>
